<compile_context>
chip_gen: v5e
topology: v5e:2x2
jax: 0.10.0
libtpu: 0.0.40
codegen_flags: <defaults>
</compile_context>

<pallas_src>
import functools

import jax
import jax.numpy as jnp
import numpy as np
from jax.experimental import pallas as pl
from jax.experimental.pallas import tpu as pltpu


def _round_up(x, m):
    return (x + m - 1) // m * m


# ----------------------------------------------------------------------------
# Fused kernel: per-K streamed conv + max-pool + bias + ReLU + both heads.
# ----------------------------------------------------------------------------
def _cnn_text_fused_kernel(*refs, Ks, Co, W_true, W_pad, tile_n):
    nK = len(Ks)
    emb_ref = refs[0]                         # (tile_n * W_pad, D) bf16
    wk_refs = refs[1:1 + nK]                  # per-K conv weights (D, K*Co)
    cb_ref, fw_ref, fb_ref, out_ref = refs[1 + nK:1 + nK + 4]

    emb2 = emb_ref[...]                       # already flat: no in-kernel reshape

    pooled = []
    for K, wk_ref in zip(Ks, wk_refs):
        # Stream one kernel size at a time: only this K's (R, K*Co) f32 score
        # slab is live, then it is discarded before the next K.
        s = jnp.dot(emb2, wk_ref[...], preferred_element_type=jnp.float32)
        s3 = s.reshape(tile_n, W_pad, K * Co)          # free view (W_pad % 8 == 0)
        L = W_true - K + 1                             # valid conv windows only
        acc = s3[:, 0:L, 0:Co]
        for k in range(1, K):
            # TODO(synk): unaligned sublane/lane slice -> relayout copy; could
            # use pltpu.roll along time + masked max, or 128-padded per-shift
            # weight blocks, to move this onto the XLU.
            acc = acc + s3[:, k:k + L, k * Co:(k + 1) * Co]
        pooled.append(jnp.max(acc, axis=1))            # (tile_n, Co) f32
    pooled = jnp.concatenate(pooled, axis=-1)          # (tile_n, nK*Co)

    # Bias + ReLU after max-over-time (exact: ReLU monotone, bias constant
    # over time) -> elementwise work is (tile_n, nK*Co) not (.., W, ..).
    feat = jnp.maximum(pooled + cb_ref[...], 0.0)

    # Both heads share the LHS -> one matmul into a 128-lane-dense output.
    logits = jnp.dot(feat.astype(fw_ref.dtype), fw_ref[...],
                     preferred_element_type=jnp.float32) + fb_ref[...]
    out_ref[...] = logits                              # (tile_n, Cpad) f32


def _vmem_capacity_bytes():
    # v7x: 64 MiB per TensorCore; v5e/v6e: 128 MiB.  Conservative fallback.
    try:
        return int(pltpu.get_tpu_info().vmem_capacity_bytes)
    except Exception:
        return 64 * 1024 * 1024


def cnn_text_fused(emb, conv_ws, conv_b, fc_w, fc_b, Ks, Co, *, tile_n=None):
    """emb: (N, W, D) bf16. Returns (N, Cpad) f32 packed-head logits."""
    N, W, D = emb.shape
    Ks = tuple(Ks)
    assert W >= max(Ks), "sequence shorter than the largest conv kernel size"
    Cpad = fc_w.shape[-1]

    # Pad time to the bf16 sublane tile and flatten (N, W, D) -> (N*W, D) in
    # HBM (free metadata reshape): the in-kernel score split then stays a view.
    W_pad = _round_up(W, 16)
    if W_pad != W:
        emb = jnp.pad(emb, ((0, 0), (0, W_pad - W), (0, 0)))

    # --- VMEM budget model -> tile_n -------------------------------------
    weight_bytes = 2 * (sum(int(w.size) * w.dtype.itemsize for w in conv_ws)
                        + int(fc_w.size) * fc_w.dtype.itemsize
                        + int(conv_b.size) * 4 + int(fc_b.size) * 4)

    def _tile_bytes(tn):
        emb_b = 2 * tn * W_pad * D * 2                 # double-buffered bf16 emb
        out_b = 2 * tn * Cpad * 4                      # double-buffered f32 out
        inter = max(tn * W_pad * K * Co * 4            # per-K f32 score slab
                    + 2 * tn * W_pad * Co * 4          # shift-add acc slack
                    for K in Ks)
        return emb_b + out_b + inter + weight_bytes

    vmem_cap = _vmem_capacity_bytes()
    vmem_limit = min(int(vmem_cap * 0.85), 100 * 1024 * 1024)
    budget = int(vmem_limit * 0.75)

    if tile_n is None:
        tile_n = 8
        for cand in (512, 256, 128, 64, 32, 16, 8):
            if _tile_bytes(cand) <= budget:
                tile_n = cand
                break
        # >= 2 grid steps so v7x's two TensorCores both get work and the emb
        # DMA pipelines; never increases tile_n.
        tile_n = min(tile_n, max(8, _round_up(-(-N // 2), 8)))

    n_pad = _round_up(N, tile_n)
    if n_pad != N:
        emb = jnp.pad(emb, ((0, n_pad - N), (0, 0), (0, 0)))
    emb_flat = emb.reshape(n_pad * W_pad, D)

    kern = functools.partial(_cnn_text_fused_kernel, Ks=Ks, Co=Co,
                             W_true=W, W_pad=W_pad, tile_n=tile_n)

    in_specs = [pl.BlockSpec((tile_n * W_pad, D), lambda i: (i, 0))]   # batch tile
    in_specs += [pl.BlockSpec(w.shape, lambda i: (0, 0)) for w in conv_ws]
    in_specs += [pl.BlockSpec(conv_b.shape, lambda i: (0, 0)),
                 pl.BlockSpec(fc_w.shape, lambda i: (0, 0)),
                 pl.BlockSpec(fc_b.shape, lambda i: (0, 0))]

    out = pl.pallas_call(
        kern,
        out_shape=jax.ShapeDtypeStruct((n_pad, Cpad), jnp.float32),
        grid=(n_pad // tile_n,),
        in_specs=in_specs,
        out_specs=pl.BlockSpec((tile_n, Cpad), lambda i: (i, 0)),
        compiler_params=pltpu.CompilerParams(
            dimension_semantics=("parallel",),          # v7x: 2 TensorCores
            vmem_limit_bytes=int(vmem_limit)),
    )(emb_flat, *conv_ws, conv_b, fc_w, fc_b)
    return out[:N]


# ----------------------------------------------------------------------------
# Model: deterministic synthetic parameters matching CNN_Text's __init__ shapes.
# ----------------------------------------------------------------------------
class CNNTextPallas:
    def __init__(self, *, embed_num, embed_dim, class1_num, class2_num,
                 kernel_num, kernel_sizes, seed=0):
        V, D, Co = embed_num, embed_dim, kernel_num
        C1, C2 = class1_num, class2_num
        Ks = tuple(kernel_sizes)
        nK = len(Ks)
        self.Ks, self.Co, self.C1, self.C2 = Ks, Co, C1, C2

        keys = jax.random.split(jax.random.PRNGKey(seed), 1 + 2 * nK + 4)
        kit = iter(keys)

        # nn.Embedding(V, D) -- stored bf16 so the gathered emb feeds the MXU.
        self.embed_table = jax.random.normal(next(kit), (V, D),
                                             jnp.float32).astype(jnp.bfloat16)

        # convs1: per K, torch weight (Co, 1, K, D), bias (Co,).  Each K gets
        # its OWN (D, K*Co) matrix; column block k is torch_w[:, 0, k, :].T.
        self.conv_ws, biases = [], []
        for K in Ks:
            wk = jax.random.normal(next(kit), (Co, 1, K, D), jnp.float32) * 0.1
            bk = jax.random.normal(next(kit), (Co,), jnp.float32) * 0.1
            blocks = [wk[:, 0, k, :].T for k in range(K)]
            self.conv_ws.append(
                jnp.concatenate(blocks, axis=1).astype(jnp.bfloat16))
            biases.append(bk)
        self.conv_b = jnp.concatenate(biases)[None, :]       # (1, nK*Co) f32

        # fc1 / fc2 (torch weight (C, F)) packed transposed side-by-side,
        # padded to a 128-lane-dense output block.
        F_dim = nK * Co
        self.Cpad = _round_up(C1 + C2, 128)
        fc1_w = jax.random.normal(next(kit), (C1, F_dim), jnp.float32) * 0.1
        fc1_b = jax.random.normal(next(kit), (C1,), jnp.float32) * 0.1
        fc2_w = jax.random.normal(next(kit), (C2, F_dim), jnp.float32) * 0.1
        fc2_b = jax.random.normal(next(kit), (C2,), jnp.float32) * 0.1
        fc_w = jnp.zeros((F_dim, self.Cpad), jnp.float32)
        fc_w = fc_w.at[:, :C1].set(fc1_w.T).at[:, C1:C1 + C2].set(fc2_w.T)
        self.fc_w = fc_w.astype(jnp.bfloat16)
        fc_b = jnp.zeros((1, self.Cpad), jnp.float32)
        self.fc_b = fc_b.at[0, :C1].set(fc1_b).at[0, C1:C1 + C2].set(fc2_b)

        # convs2 exists in the torch module but the branch using it is dead
        # code in forward() (x2 is overwritten before fc2); not materialized.
        # TODO(synk): training-mode dropout not implemented (eval identity).

    def __call__(self, token_ids):
        # TODO(synk): embedding gather left in XLA glue; could be moved
        # in-kernel with scalar-prefetched token ids + per-row DMA.
        emb = self.embed_table[token_ids]                    # (N, W, D) bf16
        logits = cnn_text_fused(emb, self.conv_ws, self.conv_b,
                                self.fc_w, self.fc_b, self.Ks, self.Co)
        return logits[:, :self.C1], logits[:, self.C1:self.C1 + self.C2]


# ----------------------------------------------------------------------------
# Pure-JAX reference (torch-order math: per-window conv, ReLU before pool).
# ----------------------------------------------------------------------------
def reference_forward(model, token_ids):
    emb = model.embed_table[token_ids].astype(jnp.float32)   # (N, W, D)
    N, W, D = emb.shape
    Co = model.Co
    feats = []
    for j, K in enumerate(model.Ks):
        L = W - K + 1
        cw = model.conv_ws[j].astype(jnp.float32)            # (D, K*Co)
        s = jnp.zeros((N, L, Co), jnp.float32)
        for k in range(K):
            w_k = cw[:, k * Co:(k + 1) * Co]                 # (D, Co)
            s = s + jnp.einsum('nld,dc->nlc', emb[:, k:k + L, :], w_k)
        s = jnp.maximum(s + model.conv_b[0, j * Co:(j + 1) * Co], 0.0)
        feats.append(jnp.max(s, axis=1))
    feat = jnp.concatenate(feats, axis=-1)
    feat = feat.astype(jnp.bfloat16).astype(jnp.float32)     # mirror kernel cast
    logits = feat @ model.fc_w.astype(jnp.float32) + model.fc_b[0]
    return logits[:, :model.C1], logits[:, model.C1:model.C1 + model.C2]


if __name__ == "__main__":
    # Small config consistent with the module's forward.
    V, D, Co = 100, 32, 8
    Ks = (3, 4, 5)
    C1, C2 = 4, 5
    N, W = 2, 16

    model = CNNTextPallas(embed_num=V, embed_dim=D, class1_num=C1,
                          class2_num=C2, kernel_num=Co, kernel_sizes=Ks,
                          seed=0)

    x = jax.random.randint(jax.random.PRNGKey(0), (N, W), 0, V, dtype=jnp.int32)

    logit1, logit2 = model(x)
    jax.block_until_ready((logit1, logit2))

    assert logit1.shape == (N, C1) and logit1.dtype == jnp.float32
    assert logit2.shape == (N, C2) and logit2.dtype == jnp.float32

    r1, r2 = reference_forward(model, x)
    np.testing.assert_allclose(np.asarray(logit1), np.asarray(r1),
                               rtol=1e-2, atol=1e-2)
    np.testing.assert_allclose(np.asarray(logit2), np.asarray(r2),
                               rtol=1e-2, atol=1e-2)

    print("KERNEL_OK")
</pallas_src>

<mosaic_0001>
module attributes {stable_mosaic.version = 11 : i64} {
  func.func @_cnn_text_fused_kernel(%arg0: i32, %arg1: memref<128x32xbf16, #tpu.memory_space<vmem>>, %arg2: memref<32x24xbf16, #tpu.memory_space<vmem>>, %arg3: memref<32x32xbf16, #tpu.memory_space<vmem>>, %arg4: memref<32x40xbf16, #tpu.memory_space<vmem>>, %arg5: memref<1x24xf32, #tpu.memory_space<vmem>>, %arg6: memref<24x128xbf16, #tpu.memory_space<vmem>>, %arg7: memref<1x128xf32, #tpu.memory_space<vmem>>, %arg8: memref<8x128xf32, #tpu.memory_space<vmem>>) attributes {dimension_semantics = [#tpu.dimension_semantics<parallel>], iteration_bounds = array<i64: 1>, scalar_prefetch = 0 : i64, scratch_operands = 0 : i64, tpu.core_type = #tpu.core_type<tc>, window_params = [{transform_indices = @transform_0, window_bounds = array<i64: 128, 32>}, {pipeline_mode = #tpu.pipeline_mode<synchronous>, transform_indices = @transform_1, window_bounds = array<i64: 32, 24>}, {pipeline_mode = #tpu.pipeline_mode<synchronous>, transform_indices = @transform_2, window_bounds = array<i64: 32, 32>}, {pipeline_mode = #tpu.pipeline_mode<synchronous>, transform_indices = @transform_3, window_bounds = array<i64: 32, 40>}, {pipeline_mode = #tpu.pipeline_mode<synchronous>, transform_indices = @transform_4, window_bounds = array<i64: 1, 24>}, {pipeline_mode = #tpu.pipeline_mode<synchronous>, transform_indices = @transform_5, window_bounds = array<i64: 24, 128>}, {pipeline_mode = #tpu.pipeline_mode<synchronous>, transform_indices = @transform_6, window_bounds = array<i64: 1, 128>}, {transform_indices = @transform_7, window_bounds = array<i64: 8, 128>}]} {
    %c0 = arith.constant 0 : index
    %c0_0 = arith.constant 0 : index
    %0 = vector.load %arg1[%c0, %c0_0] : memref<128x32xbf16, #tpu.memory_space<vmem>>, vector<128x32xbf16>
    %c0_1 = arith.constant 0 : index
    %c0_2 = arith.constant 0 : index
    %1 = vector.load %arg2[%c0_1, %c0_2] : memref<32x24xbf16, #tpu.memory_space<vmem>>, vector<32x24xbf16>
    %cst = arith.constant dense<0.000000e+00> : vector<128x24xf32>
    %2 = tpu.matmul %0, %1, %cst {dimension_numbers = #tpu.dot_dimension_numbers<[1], [0], [0], [1], [0, 0, 1, 1], [], []>} : vector<128x32xbf16>, vector<32x24xbf16>, vector<128x24xf32> -> vector<128x24xf32>
    %3 = vector.shape_cast %2 : vector<128x24xf32> to vector<8x16x24xf32>
    %4 = vector.extract_strided_slice %3 {offsets = [0, 0, 0], sizes = [8, 14, 8], strides = [1, 1, 1]} : vector<8x16x24xf32> to vector<8x14x8xf32>
    %5 = vector.extract_strided_slice %3 {offsets = [0, 1, 8], sizes = [8, 14, 8], strides = [1, 1, 1]} : vector<8x16x24xf32> to vector<8x14x8xf32>
    %6 = arith.addf %4, %5 : vector<8x14x8xf32>
    %7 = vector.extract_strided_slice %3 {offsets = [0, 2, 16], sizes = [8, 14, 8], strides = [1, 1, 1]} : vector<8x16x24xf32> to vector<8x14x8xf32>
    %8 = arith.addf %6, %7 : vector<8x14x8xf32>
    %cst_3 = arith.constant dense<0xFF800000> : vector<8x8xf32>
    %9 = vector.multi_reduction <maximumf>, %8, %cst_3 [1] : vector<8x14x8xf32> to vector<8x8xf32>
    %c0_4 = arith.constant 0 : index
    %c0_5 = arith.constant 0 : index
    %10 = vector.load %arg3[%c0_4, %c0_5] : memref<32x32xbf16, #tpu.memory_space<vmem>>, vector<32x32xbf16>
    %cst_6 = arith.constant dense<0.000000e+00> : vector<128x32xf32>
    %11 = tpu.matmul %0, %10, %cst_6 {dimension_numbers = #tpu.dot_dimension_numbers<[1], [0], [0], [1], [0, 0, 1, 1], [], []>} : vector<128x32xbf16>, vector<32x32xbf16>, vector<128x32xf32> -> vector<128x32xf32>
    %12 = vector.shape_cast %11 : vector<128x32xf32> to vector<8x16x32xf32>
    %13 = vector.extract_strided_slice %12 {offsets = [0, 0, 0], sizes = [8, 13, 8], strides = [1, 1, 1]} : vector<8x16x32xf32> to vector<8x13x8xf32>
    %14 = vector.extract_strided_slice %12 {offsets = [0, 1, 8], sizes = [8, 13, 8], strides = [1, 1, 1]} : vector<8x16x32xf32> to vector<8x13x8xf32>
    %15 = arith.addf %13, %14 : vector<8x13x8xf32>
    %16 = vector.extract_strided_slice %12 {offsets = [0, 2, 16], sizes = [8, 13, 8], strides = [1, 1, 1]} : vector<8x16x32xf32> to vector<8x13x8xf32>
    %17 = arith.addf %15, %16 : vector<8x13x8xf32>
    %18 = vector.extract_strided_slice %12 {offsets = [0, 3, 24], sizes = [8, 13, 8], strides = [1, 1, 1]} : vector<8x16x32xf32> to vector<8x13x8xf32>
    %19 = arith.addf %17, %18 : vector<8x13x8xf32>
    %cst_7 = arith.constant dense<0xFF800000> : vector<8x8xf32>
    %20 = vector.multi_reduction <maximumf>, %19, %cst_7 [1] : vector<8x13x8xf32> to vector<8x8xf32>
    %c0_8 = arith.constant 0 : index
    %c0_9 = arith.constant 0 : index
    %21 = vector.load %arg4[%c0_8, %c0_9] : memref<32x40xbf16, #tpu.memory_space<vmem>>, vector<32x40xbf16>
    %cst_10 = arith.constant dense<0.000000e+00> : vector<128x40xf32>
    %22 = tpu.matmul %0, %21, %cst_10 {dimension_numbers = #tpu.dot_dimension_numbers<[1], [0], [0], [1], [0, 0, 1, 1], [], []>} : vector<128x32xbf16>, vector<32x40xbf16>, vector<128x40xf32> -> vector<128x40xf32>
    %23 = vector.shape_cast %22 : vector<128x40xf32> to vector<8x16x40xf32>
    %24 = vector.extract_strided_slice %23 {offsets = [0, 0, 0], sizes = [8, 12, 8], strides = [1, 1, 1]} : vector<8x16x40xf32> to vector<8x12x8xf32>
    %25 = vector.extract_strided_slice %23 {offsets = [0, 1, 8], sizes = [8, 12, 8], strides = [1, 1, 1]} : vector<8x16x40xf32> to vector<8x12x8xf32>
    %26 = arith.addf %24, %25 : vector<8x12x8xf32>
    %27 = vector.extract_strided_slice %23 {offsets = [0, 2, 16], sizes = [8, 12, 8], strides = [1, 1, 1]} : vector<8x16x40xf32> to vector<8x12x8xf32>
    %28 = arith.addf %26, %27 : vector<8x12x8xf32>
    %29 = vector.extract_strided_slice %23 {offsets = [0, 3, 24], sizes = [8, 12, 8], strides = [1, 1, 1]} : vector<8x16x40xf32> to vector<8x12x8xf32>
    %30 = arith.addf %28, %29 : vector<8x12x8xf32>
    %31 = vector.extract_strided_slice %23 {offsets = [0, 4, 32], sizes = [8, 12, 8], strides = [1, 1, 1]} : vector<8x16x40xf32> to vector<8x12x8xf32>
    %32 = arith.addf %30, %31 : vector<8x12x8xf32>
    %cst_11 = arith.constant dense<0xFF800000> : vector<8x8xf32>
    %33 = vector.multi_reduction <maximumf>, %32, %cst_11 [1] : vector<8x12x8xf32> to vector<8x8xf32>
    %34 = tpu.concatenate %9, %20, %33 in 1 : vector<8x8xf32>, vector<8x8xf32>, vector<8x8xf32> -> vector<8x24xf32>
    %c0_12 = arith.constant 0 : index
    %c0_13 = arith.constant 0 : index
    %35 = vector.load %arg5[%c0_12, %c0_13] : memref<1x24xf32, #tpu.memory_space<vmem>>, vector<1x24xf32>
    %36 = vector.broadcast %35 : vector<1x24xf32> to vector<8x24xf32>
    %37 = arith.addf %34, %36 : vector<8x24xf32>
    %cst_14 = arith.constant 0.000000e+00 : f32
    %38 = vector.broadcast %cst_14 : f32 to vector<8x24xf32>
    %39 = arith.maximumf %37, %38 : vector<8x24xf32>
    %40 = arith.truncf %39 : vector<8x24xf32> to vector<8x24xbf16>
    %c0_15 = arith.constant 0 : index
    %c0_16 = arith.constant 0 : index
    %41 = vector.load %arg6[%c0_15, %c0_16] : memref<24x128xbf16, #tpu.memory_space<vmem>>, vector<24x128xbf16>
    %cst_17 = arith.constant dense<0.000000e+00> : vector<8x128xf32>
    %42 = tpu.matmul %40, %41, %cst_17 {dimension_numbers = #tpu.dot_dimension_numbers<[1], [0], [0], [1], [0, 0, 1, 1], [], []>} : vector<8x24xbf16>, vector<24x128xbf16>, vector<8x128xf32> -> vector<8x128xf32>
    %c0_18 = arith.constant 0 : index
    %c0_19 = arith.constant 0 : index
    %43 = vector.load %arg7[%c0_18, %c0_19] : memref<1x128xf32, #tpu.memory_space<vmem>>, vector<1x128xf32>
    %44 = vector.broadcast %43 : vector<1x128xf32> to vector<8x128xf32>
    %45 = arith.addf %42, %44 : vector<8x128xf32>
    %c0_20 = arith.constant 0 : index
    %c0_21 = arith.constant 0 : index
    %46 = vector.load %arg8[%c0_20, %c0_21] : memref<8x128xf32, #tpu.memory_space<vmem>>, vector<8x128xf32>
    tpu.vector_store %arg8[%c0_20, %c0_21], %45 {strides = array<i32>} : memref<8x128xf32, #tpu.memory_space<vmem>>, vector<8x128xf32>,
    return
  }
  func.func @transform_0(%arg0: i32) -> (i32, i32) {
    %c0_i32 = arith.constant 0 : i32
    %c0_i32_0 = arith.constant 0 : i32
    return %arg0, %c0_i32 : i32, i32
  }
  func.func @transform_1(%arg0: i32) -> (i32, i32) {
    %c0_i32 = arith.constant 0 : i32
    %c0_i32_0 = arith.constant 0 : i32
    %c0_i32_1 = arith.constant 0 : i32
    return %c0_i32, %c0_i32_0 : i32, i32
  }
  func.func @transform_2(%arg0: i32) -> (i32, i32) {
    %c0_i32 = arith.constant 0 : i32
    %c0_i32_0 = arith.constant 0 : i32
    %c0_i32_1 = arith.constant 0 : i32
    return %c0_i32, %c0_i32_0 : i32, i32
  }
  func.func @transform_3(%arg0: i32) -> (i32, i32) {
    %c0_i32 = arith.constant 0 : i32
    %c0_i32_0 = arith.constant 0 : i32
    %c0_i32_1 = arith.constant 0 : i32
    return %c0_i32, %c0_i32_0 : i32, i32
  }
  func.func @transform_4(%arg0: i32) -> (i32, i32) {
    %c0_i32 = arith.constant 0 : i32
    %c0_i32_0 = arith.constant 0 : i32
    %c0_i32_1 = arith.constant 0 : i32
    return %c0_i32, %c0_i32_0 : i32, i32
  }
  func.func @transform_5(%arg0: i32) -> (i32, i32) {
    %c0_i32 = arith.constant 0 : i32
    %c0_i32_0 = arith.constant 0 : i32
    %c0_i32_1 = arith.constant 0 : i32
    return %c0_i32, %c0_i32_0 : i32, i32
  }
  func.func @transform_6(%arg0: i32) -> (i32, i32) {
    %c0_i32 = arith.constant 0 : i32
    %c0_i32_0 = arith.constant 0 : i32
    %c0_i32_1 = arith.constant 0 : i32
    return %c0_i32, %c0_i32_0 : i32, i32
  }
  func.func @transform_7(%arg0: i32) -> (i32, i32) {
    %c0_i32 = arith.constant 0 : i32
    %c0_i32_0 = arith.constant 0 : i32
    return %arg0, %c0_i32 : i32, i32
  }
}

</mosaic_0001>

<bundles_post_ra>
// kernel: tpu_custom_call.1
= control target key start
LH: loop header
LB: loop body
LE: loop exit
PB: predicated region body
PF: predicated region fallthrough
CT: control target
= control target key end

     0   :  { %s2534_s0 = inlined_call_operand.vmem [shape: bf16[128,32], index: 0, kind: input, shape index: {}]   ;;  %s2535_s1 = inlined_call_operand.vmem [shape: bf16[32,24], index: 1, kind: input, shape index: {}]   ;;  %s2536_s2 = inlined_call_operand.vmem [shape: bf16[32,32], index: 2, kind: input, shape index: {}]   ;;  %s2537_s3 = inlined_call_operand.vmem [shape: bf16[32,40], index: 3, kind: input, shape index: {}]   ;;  %s2538_s4 = inlined_call_operand.vmem [shape: f32[1,24], index: 4, kind: input, shape index: {}]   ;;  %s2539_s5 = inlined_call_operand.vmem [shape: bf16[24,128], index: 5, kind: input, shape index: {}]   ;;  %s2540_s6 = inlined_call_operand.vmem [shape: f32[1,128], index: 6, kind: input, shape index: {}]   ;;  %s2541_s7 = inlined_call_operand.hbm [shape: f32[8,128], index: 7, kind: output, shape index: {}]  }
   0x1   :  { %v1584_v0 = vld [vmem:[%s2535_s1 + $0x8] sm:$0xff]  ;;  %v1583_v2 = vld [vmem:[%s2535_s1] sm:$0xff] }
   0x2   :  { %v1586_v1 = vld [vmem:[%s2536_s2 + $0x8] sm:$0xff]  ;;  %131 = vmatpush.bf16.msra.mxu0 %v1584_v0  ;;  %v1585_v3 = vld [vmem:[%s2536_s2] sm:$0xff]  ;;  %1590 = vmatpush.bf16.msra.mxu3 %v1584_v0 }
   0x3   :  { %464 = vmatpush.bf16.msra.mxu1 %v1586_v1  ;;  %v1588_v4 = vld [vmem:[%s2537_s3 + $0x8] sm:$0xff]  ;;  %v1587_v5 = vld [vmem:[%s2537_s3] sm:$0xff] }
   0x4   :  { %883 = vmatpush.bf16.msra.mxu2 %v1588_v4 }
   0x5   :  { %12 = vsyncpa [#allocation3], 0  ;;  %v1575_v6 = vld [vmem:[%s2534_s0] sm:$0xff]  ;;  %vm100_vm0 = vcmask 261120   ;;  %v1582_v7 = vld [vmem:[%s2534_s0 + $0x38] sm:$0xff]  ;;  %s1631_s22 = smov 112  }
   0x6   :  { %132 = vmatpush.bf16.msra.mxu0 %v1583_v2  ;;  %1591 = vmatpush.bf16.msra.mxu3 %v1583_v2  ;;  %v1576_v8 = vld [vmem:[%s2534_s0 + $0x8] sm:$0xff]  ;;  %v1577_v9 = vld [vmem:[%s2534_s0 + $0x10] sm:$0xff]  ;;  %v1578_v10 = vld [vmem:[%s2534_s0 + $0x18] sm:$0xff]  ;;  %s1632_s23 = smov 120   ;;  %vm190_vm1 = vcmask 1046528   ;;  %vm279_vm2 = vcmask 1045504  }
   0x7   :  { %465 = vmatpush.bf16.msra.mxu1 %v1585_v3  ;;  %v1579_v11 = vld [vmem:[%s2534_s0 + $0x20] sm:$0xff]  ;;  %vm699_vm3 = vcmask 1044480   ;;  %s1633_s24 = smov 104   ;;  %v1580_v32 = vld [vmem:[%s2534_s0 + $0x28] sm:$0xff]  ;;  %v1581_v50 = vld [vmem:[%s2534_s0 + $0x30] sm:$0xff]  ;;  %vm370_vm4 = vcmask 62464  }
   0x8   :  { %884 = vmatpush.bf16.msra.mxu2 %v1587_v5  ;;  %vm368_vm5 = vcmask 64512   ;;  %vm789_vm6 = vcmask 61440   ;;  %vm1376_vm7 = vcmask 1041409   ;;  %vm1378_vm8 = vcmask 1042434   ;;  %s1634_s0 = smov 96   ;;  %s1635_s29 = smov 8  }
   0x9   :  { %1530 = vmatmul.msk.bf16.vlgmr.msra.gmra.mxu0 %vm100_vm0, %v1575_v6  ;;  %1537 = vmatmul.msk.bf16.vlgmr.msra.gmra.mxu3 %vm100_vm0, %v1582_v7  ;;  %vm1206_vm9 = vcmask 1043456   ;;  %vm1380_vm10 = vcmask 1043459   ;;  %vm1382_vm11 = vcmask 1044484   ;;  %vm1384_vm12 = vcmask 1045509   ;;  %s1636_s30 = smov 16  }
   0xa   :  { %1592 = vmatpush.bf16.msrb.mxu3 %v1586_v1  ;;  %1546 = vmatmul.msk.bf16.vlgmr.msra.gmra.mxu1 %vm100_vm0, %v1575_v6  ;;  %vm1386_vm13 = vcmask 1046534   ;;  %vm1388_vm14 = vcmask 1047559   ;;  %vm1296_vm15 = vcmask 60416  }
   0xb   :  { %1562 = vmatmul.msk.bf16.vlgmr.msra.gmra.mxu2 %vm100_vm0, %v1575_v6 }
   0xe   :  { %1593 = vmatpush.bf16.msrb.mxu3 %v1585_v3 }
  0x12   :  { %1594 = vmatpush.bf16.msra.mxu3 %v1588_v4 }
  0x16   :  { %1595 = vmatpush.bf16.msra.mxu3 %v1587_v5 }
  0x19   :  { %1531 = vmatmul.msk.bf16.gmra.mxu0 %vm100_vm0, %v1576_v8  ;;  %1553 = vmatmul.msk.bf16.vlgmr.msrb.gmra.mxu3 %vm100_vm0, %v1582_v7 }
  0x1a   :  { %1547 = vmatmul.msk.bf16.gmra.mxu1 %vm100_vm0, %v1576_v8 }
  0x1b   :  { %1563 = vmatmul.msk.bf16.gmra.mxu2 %vm100_vm0, %v1576_v8 }
  0x29   :  { %1532 = vmatmul.msk.bf16.gmra.mxu0 %vm100_vm0, %v1577_v9  ;;  %1569 = vmatmul.msk.bf16.vlgmr.msra.gmra.mxu3 %vm100_vm0, %v1582_v7 }
  0x2a   :  { %1548 = vmatmul.msk.bf16.gmra.mxu1 %vm100_vm0, %v1577_v9 }
  0x2b   :  { %1564 = vmatmul.msk.bf16.gmra.mxu2 %vm100_vm0, %v1577_v9 }
  0x39   :  { %1533 = vmatmul.msk.bf16.gmra.mxu0 %vm100_vm0, %v1578_v10 }
  0x3a   :  { %1549 = vmatmul.msk.bf16.gmra.mxu1 %vm100_vm0, %v1578_v10 }
  0x3b   :  { %1565 = vmatmul.msk.bf16.gmra.mxu2 %vm100_vm0, %v1578_v10 }
  0x49   :  { %1534 = vmatmul.msk.bf16.gmra.mxu0 %vm100_vm0, %v1579_v11 }
  0x4a   :  { %1550 = vmatmul.msk.bf16.gmra.mxu1 %vm100_vm0, %v1579_v11 }
  0x4b   :  { %1566 = vmatmul.msk.bf16.gmra.mxu2 %vm100_vm0, %v1579_v11 }
  0x59   :  { %1535 = vmatmul.msk.bf16.gmra.mxu0 %vm100_vm0, %v1580_v32 }
  0x5a   :  { %1551 = vmatmul.msk.bf16.gmra.mxu1 %vm100_vm0, %v1580_v32 }
  0x5b   :  { %1567 = vmatmul.msk.bf16.gmra.mxu2 %vm100_vm0, %v1580_v32 }
  0x69   :  { %1536 = vmatmul.msk.bf16.gmra.mxu0 %vm100_vm0, %v1581_v50 }
  0x6a   :  { %1552 = vmatmul.msk.bf16.gmra.mxu1 %vm100_vm0, %v1581_v50 }
  0x6b   :  { %1568 = vmatmul.msk.bf16.gmra.mxu2 %vm100_vm0, %v1581_v50  ;;  %vm1428_vm0 = vcmask 130048  }
  0x86   :  { %v1732_v12 = vpop.f32.mrf.mxu0 }
  0x87   :  { %v1734_v13 = vpop.f32.mrf.mxu1  ;;  %v280_v21 = vrot.slane %v1732_v12, 2  ;;  %v191_v35 = vrot.slane %v1732_v12, 1 }
  0x88   :  { %v523_v22 = vrot.slane %v1734_v13, 1  ;;  %v700_v28 = vrot.slane %v1734_v13, 3  ;;  %v611_v41 = vrot.slane %v1734_v13, 2 }
  0x8c   :  { %v1745_v19 = vpop.f32.mrf.mxu3 }
  0x8d   :  { %v212_v44 = vrot.slane %v1745_v19, 1  ;;  %v301_v57 = vrot.slane %v1745_v19, 2 }
  0x8e   :  { %v1736_v14 = vpop.f32.mrf.mxu0  ;;  %v1751_v23 = vpop.f32.mrf.mxu2 }
  0x8f   :  { %v1738_v15 = vpop.f32.mrf.mxu1  ;;  %v281_v17 = vrot.slane %v1736_v14, 2  ;;  %v192_v18 = vrot.slane %v1736_v14, 1  ;;  %v1030_v34 = vrot.slane %v1751_v23, 2  ;;  %v1118_v40 = vrot.slane %v1751_v23, 3 }
  0x90   :  { %v612_v16 = vrot.slane %v1738_v15, 2  ;;  %v524_v20 = vrot.slane %v1738_v15, 1  ;;  %v701_v26 = vrot.slane %v1738_v15, 3  ;;  %v942_v51 = vrot.slane %v1751_v23, 1 }
  0x91   :  { %306 = vrot.lane.b32.xlu2 %v281_v17, %s1631_s22  ;;  %217 = vrot.lane.b32.xlu0 %v192_v18, %s1632_s23  ;;  %v282_v25 = vsel %vm279_vm2, %v280_v21, %v281_v17  ;;  %v193_v37 = vsel %vm190_vm1, %v191_v35, %v192_v18 }
  0x92   :  { %637 = vrot.lane.b32.xlu1 %v612_v16, %s1631_s22  ;;  %v525_v24 = vsel %vm190_vm1, %v523_v22, %v524_v20  ;;  %v702_v30 = vsel %vm699_vm3, %v700_v28, %v701_v26  ;;  %v613_v43 = vsel %vm279_vm2, %v611_v41, %v612_v16 }
  0x94   :  { %v1759_v27 = vpop.f32.mrf.mxu3 }
  0x95   :  { %v302_v29 = vrot.slane %v1759_v27, 2  ;;  %v213_v45 = vrot.slane %v1759_v27, 1 }
  0x96   :  { %v1764_v31 = vpop.f32.mrf.mxu2  ;;  %v1782_v38 = vpop.f32.mrf.mxu0 }
  0x97   :  { %v1031_v33 = vrot.slane %v1764_v31, 2  ;;  %v1119_v39 = vrot.slane %v1764_v31, 3  ;;  %v214_v48 = vsel %vm190_vm1, %v212_v44, %v213_v45  ;;  %v1799_v49 = vpop.f32.mrf.mxu1  ;;  %v943_v52 = vrot.slane %v1764_v31, 1 }
  0x98   :  { %v194_v56 = vrot.slane %v1782_v38, 1  ;;  %v303_v60 = vsel %vm279_vm2, %v301_v57, %v302_v29  ;;  %v526_v61 = vrot.slane %v1799_v49, 1  ;;  %v614_v3 = vrot.slane %v1799_v49, 2 }
  0x99   :  { %547 = vrot.lane.b32.xlu2 %v525_v24, %s1632_s23  ;;  %549 = vrot.lane.b32.xlu0 %v524_v20, %s1632_s23  ;;  %v1032_v36 = vsel %vm279_vm2, %v1030_v34, %v1031_v33  ;;  %v1120_v42 = vsel %vm699_vm3, %v1118_v40, %v1119_v39  ;;  %v944_v54 = vsel %vm190_vm1, %v942_v51, %v943_v52  ;;  %v703_v4 = vrot.slane %v1799_v49, 3 }
  0x9a   :  { %304 = vrot.lane.b32.xlu1 %v282_v25, %s1631_s22  ;;  %v283_v5 = vrot.slane %v1782_v38, 2 }
  0x9c   :  { %v1833_v2 = vpop.f32.mrf.mxu3 }
  0x9e   :  { %v1795_v46 = vpop.f32.mrf.mxu0  ;;  %v1829_v63 = vpop.f32.mrf.mxu2 }
  0x9f   :  { %v195_v47 = vrot.slane %v1795_v46, 1  ;;  %v284_v53 = vrot.slane %v1795_v46, 2  ;;  %v1817_v55 = vpop.f32.mrf.mxu1  ;;  %v1033_v16 = vrot.slane %v1829_v63, 2  ;;  %v1121_v21 = vrot.slane %v1829_v63, 3 }
  0xa0   :  { %v527_v58 = vrot.slane %v1817_v55, 1  ;;  %v704_v62 = vrot.slane %v1817_v55, 3  ;;  %v615_v0 = vrot.slane %v1817_v55, 2 }
  0xa1   :  { %724 = vrot.lane.b32.xlu2 %v702_v30, %s1633_s24  ;;  %726 = vrot.lane.b32.xlu0 %v701_v26, %s1633_s24  ;;  %v196_v59 = vsel %vm190_vm1, %v194_v56, %v195_v47  ;;  %v285_v8 = vsel %vm279_vm2, %v283_v5, %v284_v53 }
  0xa2   :  { %334 = vrot.lane.b32.xlu1 %v302_v29, %s1631_s22  ;;  %v528_v1 = vsel %vm190_vm1, %v526_v61, %v527_v58  ;;  %v616_v6 = vsel %vm279_vm2, %v614_v3, %v615_v0  ;;  %v705_v7 = vsel %vm699_vm3, %v703_v4, %v704_v62  ;;  %v544_v29 = vrot.slane %v1833_v2, 1 }
  0xa4   :  { %v1849_v10 = vpop.f32.mrf.mxu3 }
  0xa5   :  { %v545_v11 = vrot.slane %v1849_v10, 1 }
  0xa6   :  { %v1846_v9 = vpop.f32.mrf.mxu2  ;;  %v1857_v20 = vpop.f32.mrf.mxu0 }
  0xa7   :  { %v1034_v17 = vrot.slane %v1846_v9, 2  ;;  %v1122_v22 = vrot.slane %v1846_v9, 3  ;;  %v1862_v24 = vpop.f32.mrf.mxu1  ;;  %v946_v25 = vrot.slane %v1846_v9, 1  ;;  %v546_v35 = vsel %vm190_vm1, %v544_v29, %v545_v11 }
  0xa8   :  { %v529_v40 = vrot.slane %v1862_v24, 1  ;;  %v197_v50 = vrot.slane %v1857_v20, 1 }
  0xa9   :  { %1056 = vrot.lane.b32.xlu2 %v1031_v33, %s1631_s22  ;;  %215 = vrot.lane.b32.xlu0 %v193_v37, %s1632_s23  ;;  %v1035_v18 = vsel %vm279_vm2, %v1033_v16, %v1034_v17  ;;  %v1123_v26 = vsel %vm699_vm3, %v1121_v21, %v1122_v22 }
  0xaa   :  { %1054 = vrot.lane.b32.xlu1 %v1032_v36, %s1631_s22 }
  0xae   :  { %v1870_v30 = vpop.f32.mrf.mxu0  ;;  %v1874_v34 = vpop.f32.mrf.mxu2 }
  0xaf   :  { %v198_v32 = vrot.slane %v1870_v30, 1  ;;  %v287_v33 = vrot.slane %v1870_v30, 2  ;;  %v1877_v36 = vpop.f32.mrf.mxu1  ;;  %v948_v51 = vrot.slane %v1874_v34, 1 }
  0xb0   :  { %v530_v41 = vrot.slane %v1877_v36, 1 }
  0xb1   :  { %1144 = vrot.lane.b32.xlu2 %v1119_v39, %s1633_s24  ;;  %635 = vrot.lane.b32.xlu0 %v613_v43, %s1631_s22  ;;  %v945_v39 = vrot.slane %v1829_v63, 1 }
  0xb2   :  { %1142 = vrot.lane.b32.xlu1 %v1120_v42, %s1633_s24  ;;  %v618_v42 = vrot.slane %v1877_v36, 2  ;;  %v531_v44 = vsel %vm190_vm1, %v529_v40, %v530_v41 }
  0xb3   :  { %v947_v43 = vsel %vm190_vm1, %v945_v39, %v946_v25 }
  0xb9   :  { %243 = vrot.lane.b32.xlu2 %v214_v48, %s1632_s23  ;;  %245 = vrot.lane.b32.xlu0 %v213_v45, %s1632_s23  ;;  %v1892_v45 = vpop.f32.mrf.mxu2 }
  0xba   :  { %221 = vrot.lane.b32.xlu1 %v195_v47, %s1632_s23  ;;  %v1895_v47 = vpop.f32.mrf.mxu1 }
  0xc1   :  { %966 = vrot.lane.b32.xlu2 %v944_v54, %s1632_s23  ;;  %968 = vrot.lane.b32.xlu0 %v943_v52, %s1632_s23  ;;  %v949_v52 = vrot.slane %v1892_v45, 1  ;;  %v199_v54 = vsel %vm190_vm1, %v197_v50, %v198_v32 }
  0xc2   :  { %310 = vrot.lane.b32.xlu1 %v284_v53, %s1631_s22  ;;  %v1902_v53 = vpop.f32.mrf.mxu0 }
  0xc3   :  { %v950_v56 = vsel %vm190_vm1, %v948_v51, %v949_v52 }
  0xc9   :  { %553 = vrot.lane.b32.xlu2 %v527_v58, %s1632_s23  ;;  %332 = vrot.lane.b32.xlu0 %v303_v60, %s1631_s22  ;;  %v617_v60 = vrot.slane %v1862_v24, 2 }
  0xca   :  { %219 = vrot.lane.b32.xlu1 %v196_v59, %s1632_s23  ;;  %v286_v59 = vrot.slane %v1857_v20, 2 }
  0xcb   :  { %v619_v3 = vsel %vm279_vm2, %v617_v60, %v618_v42 }
  0xcc   :  { %v288_v5 = vsel %vm279_vm2, %v286_v59, %v287_v33 }
  0xd1   :  { %730 = vrot.lane.b32.xlu2 %v704_v62, %s1633_s24  ;;  %641 = vrot.lane.b32.xlu0 %v615_v0, %s1631_s22  ;;  %v1913_v62 = vpop.f32.mrf.mxu1 }
  0xd2   :  { %551 = vrot.lane.b32.xlu1 %v528_v1, %s1632_s23  ;;  %v533_v4 = vrot.slane %v1913_v62, 1 }
  0xd9   :  { %639 = vrot.lane.b32.xlu2 %v616_v6, %s1631_s22  ;;  %308 = vrot.lane.b32.xlu0 %v285_v8, %s1631_s22  ;;  %v1921_v6 = vpop.f32.mrf.mxu0 }
  0xda   :  { %728 = vrot.lane.b32.xlu1 %v705_v7, %s1633_s24  ;;  %v201_v16 = vrot.slane %v1921_v6, 1  ;;  %v290_v39 = vrot.slane %v1921_v6, 2 }
  0xe1   :  { %577 = vrot.lane.b32.xlu2 %v545_v11, %s1632_s23  ;;  %1058 = vrot.lane.b32.xlu0 %v1035_v18, %s1631_s22  ;;  %v1037_v18 = vrot.slane %v1892_v45, 2 }
  0xe2   :  { %1060 = vrot.lane.b32.xlu1 %v1034_v17, %s1631_s22 }
  0xe9   :  { %972 = vrot.lane.b32.xlu2 %v946_v25, %s1632_s23  ;;  %1146 = vrot.lane.b32.xlu0 %v1123_v26, %s1633_s24  ;;  %v1933_v25 = vpop.f32.mrf.mxu2 }
  0xea   :  { %1148 = vrot.lane.b32.xlu1 %v1122_v22, %s1633_s24 }
  0xeb   :  { %v307_v28 = vpop.permute.xlu2 %306 }
  0xf1   :  { %225 = vrot.lane.b32.xlu2 %v198_v32, %s1632_s23  ;;  %314 = vrot.lane.b32.xlu0 %v287_v33, %s1631_s22  ;;  %v1036_v32 = vrot.slane %v1874_v34, 2  ;;  %v621_v33 = vrot.slane %v1913_v62, 2 }
  0xf2   :  { %575 = vrot.lane.b32.xlu1 %v546_v35, %s1632_s23 }
  0xf3   :  { %v1882_v37 = vpop.permute.xlu2 %547  ;;  %v1038_v40 = vsel %vm279_vm2, %v1036_v32, %v1037_v18 }
  0xf9   :  { %645 = vrot.lane.b32.xlu2 %v618_v42, %s1631_s22  ;;  %555 = vrot.lane.b32.xlu0 %v531_v44, %s1632_s23  ;;  %v532_v44 = vrot.slane %v1895_v47, 1 }
  0xfa   :  { %970 = vrot.lane.b32.xlu1 %v947_v43, %s1632_s23 }
  0xfb   :  { %v1897_v48 = vpop.permute.xlu2 %724 }
 0x101   :  { %223 = vrot.lane.b32.xlu2 %v199_v54, %s1632_s23  ;;  %974 = vrot.lane.b32.xlu0 %v950_v56, %s1632_s23  ;;  %v2542_v54 = vrot.slane %v1892_v45, 3  ;;  %v1953_v56 = vpop.f32.mrf.mxu2 }
 0x102   :  { %557 = vrot.lane.b32.xlu1 %v530_v41, %s1632_s23 }
 0x103   :  { %v1909_v58 = vpop.permute.xlu2 %1056  ;;  %v218_v61 = vpop.permute.xlu0 %217 }
 0x104   :  { %v638_v57 = vpop.permute.xlu1 %637  ;;  %v264_v0 = vadd.f32 %v218_v61, %v1736_v14  ;;  %v200_v14 = vrot.slane %v1902_v53, 1 }
 0x106   :  { %v353_v1 = vadd.f32 %v307_v28, %v264_v0  ;;  %v202_v22 = vsel %vm190_vm1, %v200_v14, %v201_v16  ;;  %v534_v0 = vsel %vm190_vm1, %v532_v44, %v533_v4  ;;  %v1967_v14 = vpop.f32.mrf.mxu0  ;;  %v1039_v44 = vrot.slane %v1933_v25, 2 }
 0x109   :  { %312 = vrot.lane.b32.xlu2 %v288_v5, %s1631_s22  ;;  %561 = vrot.lane.b32.xlu0 %v533_v4, %s1632_s23  ;;  %v371_v5 = vsel %vm370_vm4, %v353_v1, -inf }
 0x10a   :  { %643 = vrot.lane.b32.xlu1 %v619_v3, %s1631_s22  ;;  %v952_v3 = vrot.slane %v1953_v56, 1 }
 0x10b   :  { %v1924_v7 = vpop.permute.xlu2 %1144  ;;  %v550_v11 = vpop.permute.xlu0 %549 }
 0x10c   :  { %v305_v8 = vpop.permute.xlu1 %304  ;;  %v596_v17 = vadd.f32 %v550_v11, %v1738_v15  ;;  %v620_v15 = vrot.slane %v1895_v47, 2 }
 0x10e   :  { %v684_v21 = vadd.f32 %v638_v57, %v596_v17  ;;  %v622_v41 = vsel %vm279_vm2, %v620_v15, %v621_v33  ;;  %v1040_v15 = vrot.slane %v1953_v56, 2 }
 0x111   :  { %1064 = vrot.lane.b32.xlu2 %v1037_v18, %s1631_s22  ;;  %227 = vrot.lane.b32.xlu0 %v202_v22, %s1632_s23 }
 0x112   :  { %976 = vrot.lane.b32.xlu1 %v949_v52, %s1632_s23  ;;  %v1124_v52 = vrot.slane %v1874_v34, 3 }
 0x113   :  { %v1936_v26 = vpop.permute.xlu2 %243  ;;  %v727_v29 = vpop.permute.xlu0 %726 }
 0x114   :  { %v335_v28 = vpop.permute.xlu1 %334  ;;  %v773_v35 = vadd.f32 %v727_v29, %v684_v21  ;;  %v1126_v61 = vsel %vm699_vm3, %v1124_v52, %v2542_v54  ;;  %v951_v21 = vrot.slane %v1933_v25, 1 }
 0x116   :  { %v953_v32 = vsel %vm190_vm1, %v951_v21, %v952_v3 }
 0x119   :  { %318 = vrot.lane.b32.xlu2 %v290_v39, %s1631_s22  ;;  %647 = vrot.lane.b32.xlu0 %v622_v41, %s1631_s22  ;;  %v1986_v41 = vpop.f32.mrf.mxu1 }
 0x11a   :  { %1062 = vrot.lane.b32.xlu1 %v1038_v40, %s1631_s22  ;;  %v790_v40 = vsel %vm789_vm6, %v773_v35, -inf }
 0x11b   :  { %v967_v42 = vpop.permute.xlu2 %966  ;;  %v216_v51 = vpop.permute.xlu0 %215 }
 0x11c   :  { %v1055_v43 = vpop.permute.xlu1 %1054  ;;  %v1014_v50 = vadd.f32 %v967_v42, %v1751_v23  ;;  %v263_v57 = vadd.f32 %v216_v51, %v1732_v12 }
 0x11e   :  { %v1102_v59 = vadd.f32 %v1055_v43, %v1014_v50  ;;  %v352_v60 = vadd.f32 %v305_v8, %v263_v57  ;;  %v595_v8 = vadd.f32 %v1882_v37, %v1734_v13  ;;  %v1990_v50 = vpop.f32.mrf.mxu0 }
 0x11f   :  { %v204_v52 = vrot.slane %v1990_v50, 1 }
 0x120   :  { %v369_v11 = vsel %vm368_vm5, %v352_v60, -inf }
 0x121   :  { %559 = vrot.lane.b32.xlu2 %v534_v0, %s1632_s23  ;;  %v1965_v12 = vmax.f32 %v369_v11, %v371_v5  ;;  %980 = vrot.lane.b32.xlu0 %v952_v3, %s1632_s23  ;;  %v2000_v0 = vpop.f32.mrf.mxu1 }
 0x122   :  { %1150 = vrot.lane.b32.xlu1 %v1126_v61, %s1633_s24  ;;  %v289_v61 = vrot.slane %v1902_v53, 2  ;;  %v536_v11 = vrot.slane %v2000_v0, 1 }
 0x123   :  { %v1972_v4 = vpop.permute.xlu2 %553  ;;  %v636_v1 = vpop.permute.xlu0 %635 }
 0x124   :  { %v1143_v17 = vpop.permute.xlu1 %1142  ;;  %v683_v22 = vadd.f32 %v636_v1, %v595_v8 }
 0x125   :  { %v1974_v18 = vadd.f32 %v1143_v17, %v1102_v59  ;;  %v2016_v17 = vpop.f32.mrf.mxu2 }
 0x126   :  { %v772_v29 = vadd.f32 %v1897_v48, %v683_v22 }
 0x128   :  { %v788_v13 = vsel %vm368_vm5, %v772_v29, -inf  ;;  %v292_v29 = vrot.slane %v1967_v14, 2 }
 0x129   :  { %978 = vrot.lane.b32.xlu2 %v953_v32, %s1632_s23  ;;  %v1984_v37 = vmax.f32 %v788_v13, %v790_v40  ;;  %1068 = vrot.lane.b32.xlu0 %v1040_v15, %s1631_s22  ;;  %v293_v32 = vrot.slane %v1990_v50, 2 }
 0x12a   :  { %229 = vrot.lane.b32.xlu1 %v201_v16, %s1632_s23  ;;  %v1041_v16 = vsel %vm279_vm2, %v1039_v44, %v1040_v15 }
 0x12b   :  { %v731_v42 = vpop.permute.xlu2 %730  ;;  %v246_v43 = vpop.permute.xlu0 %245 }
 0x12c   :  { %v222_v48 = vpop.permute.xlu1 %221  ;;  %v278_v35 = vadd.f32 %v246_v43, %v1759_v27  ;;  %v598_v43 = vadd.f32 %v1972_v4, %v1817_v55 }
 0x12d   :  { %v266_v57 = vadd.f32 %v222_v48, %v1795_v46  ;;  %v291_v46 = vsel %vm279_vm2, %v289_v61, %v290_v39  ;;  %v203_v39 = vrot.slane %v1967_v14, 1  ;;  %v2030_v48 = vpop.f32.mrf.mxu1 }
 0x12e   :  { %v367_v51 = vadd.f32 %v335_v28, %v278_v35 }
 0x131   :  { %1066 = vrot.lane.b32.xlu2 %v1041_v16, %s1631_s22  ;;  %233 = vrot.lane.b32.xlu0 %v204_v52, %s1632_s23  ;;  %v623_v16 = vrot.slane %v1986_v41, 2 }
 0x132   :  { %649 = vrot.lane.b32.xlu1 %v621_v33, %s1631_s22  ;;  %v624_v33 = vrot.slane %v2000_v0, 2 }
 0x133   :  { %v640_v59 = vpop.permute.xlu2 %639  ;;  %v969_v27 = vpop.permute.xlu0 %968 }
 0x134   :  { %v311_v60 = vpop.permute.xlu1 %310  ;;  %v1015_v3 = vadd.f32 %v969_v27, %v1764_v31  ;;  %v373_v27 = vrot.slane %v1965_v12, 4 }
 0x135   :  { %v2002_v28 = vadd.f32 %v311_v60, %v266_v57  ;;  %v2042_v60 = vpop.f32.mrf.mxu2 }
 0x136   :  { %v1103_v5 = vadd.f32 %v1909_v58, %v1015_v3  ;;  %v277_v58 = vadd.f32 %v1936_v26, %v1745_v19  ;;  %v205_v19 = vsel %vm190_vm1, %v203_v39, %v204_v52  ;;  %v294_v26 = vsel %vm279_vm2, %v292_v29, %v293_v32 }
 0x137   :  { %v955_v4 = vrot.slane %v2042_v60, 1  ;;  %v625_v39 = vsel %vm279_vm2, %v623_v16, %v624_v33 }
 0x138   :  { %v2014_v8 = vadd.f32 %v1924_v7, %v1103_v5  ;;  %v434_v7 = vsel %vm370_vm4, %v367_v51, -inf  ;;  %v535_v51 = vrot.slane %v1986_v41, 1  ;;  %v792_v5 = vrot.slane %v1984_v37, 4 }
 0x139   :  { %565 = vrot.lane.b32.xlu2 %v536_v11, %s1632_s23  ;;  %653 = vrot.lane.b32.xlu0 %v624_v33, %s1631_s22  ;;  %v954_v33 = vrot.slane %v2016_v17, 1 }
 0x13a   :  { %316 = vrot.lane.b32.xlu1 %v291_v46, %s1631_s22  ;;  %2543 = vst [vmem:[#allocation5_spill] sm:$0xff] %v2014_v8  ;;  %v537_v55 = vsel %vm190_vm1, %v535_v51, %v536_v11  ;;  %v1043_v51 = vrot.slane %v2042_v60, 2 }
 0x13b   :  { %v2021_v1 = vpop.permute.xlu2 %577  ;;  %v333_v22 = vpop.permute.xlu0 %332  ;;  %v956_v16 = vsel %vm190_vm1, %v954_v33, %v955_v4 }
 0x13c   :  { %2544 = vst [vmem:[#allocation6_spill] sm:$0xff] %v2021_v1  ;;  %v220_v21 = vpop.permute.xlu1 %219  ;;  %v366_v15 = vadd.f32 %v333_v22, %v277_v58  ;;  %v2046_v58 = vpop.f32.mrf.mxu0 }
 0x13d   :  { %v2054_v22 = vpop.f32.mrf.mxu1 }
 0x13e   :  { %v433_v40 = vsel %vm368_vm5, %v366_v15, -inf }
 0x13f   :  { %v2028_v13 = vmax.f32 %v433_v40, %v434_v7 }
 0x141   :  { %231 = vrot.lane.b32.xlu2 %v205_v19, %s1632_s23  ;;  %320 = vrot.lane.b32.xlu0 %v294_v26, %s1631_s22  ;;  %v539_v26 = vrot.slane %v2054_v22, 1 }
 0x142   :  { %322 = vrot.lane.b32.xlu1 %v293_v32, %s1631_s22 }
 0x143   :  { %v973_v44 = vpop.permute.xlu2 %972  ;;  %v642_v57 = vpop.permute.xlu0 %641 }
 0x144   :  { %v552_v35 = vpop.permute.xlu1 %551  ;;  %v686_v61 = vadd.f32 %v642_v57, %v598_v43 }
 0x145   :  { %v597_v52 = vadd.f32 %v552_v35, %v1799_v49  ;;  %v374_v49 = vmax.f32 %v1965_v12, %v373_v27 }
 0x146   :  { %v775_v46 = vadd.f32 %v731_v42, %v686_v61  ;;  %v793_v42 = vmax.f32 %v1984_v37, %v792_v5  ;;  %v380_v37 = vsel %vm370_vm4, %v2002_v28, -inf  ;;  %v1017_v61 = vadd.f32 %v973_v44, %v1846_v9 }
 0x147   :  { %v685_v3 = vadd.f32 %v640_v59, %v597_v52  ;;  %v265_v59 = vadd.f32 %v220_v21, %v1782_v38  ;;  %v375_v40 = vrot.slane %v374_v49, 2  ;;  %v2070_v52 = vpop.f32.mrf.mxu0 }
 0x148   :  { %v799_v19 = vsel %vm789_vm6, %v775_v46, -inf  ;;  %v794_v43 = vrot.slane %v793_v42, 2 }
 0x149   :  { %651 = vrot.lane.b32.xlu2 %v625_v39, %s1631_s22  ;;  %984 = vrot.lane.b32.xlu0 %v955_v4, %s1632_s23  ;;  %v376_v28 = vmax.f32 %v374_v49, %v375_v40  ;;  %v1042_v4 = vrot.slane %v2016_v17, 2  ;;  %v206_v39 = vrot.slane %v2046_v58, 1  ;;  %v2083_v49 = vpop.f32.mrf.mxu2 }
 0x14a   :  { %563 = vrot.lane.b32.xlu1 %v537_v55, %s1632_s23 }
 0x14b   :  { %v2059_v11 = vpop.permute.xlu2 %225  ;;  %v309_v32 = vpop.permute.xlu0 %308  ;;  %v377_v40 = vrot.slane %v376_v28, 1 }
 0x14c   :  { %v729_v29 = vpop.permute.xlu1 %728  ;;  %v354_v7 = vadd.f32 %v309_v32, %v265_v59 }
 0x14d   :  { %v774_v15 = vadd.f32 %v729_v29, %v685_v3  ;;  %v795_v3 = vmax.f32 %v793_v42, %v794_v43  ;;  %v207_v29 = vrot.slane %v2070_v52, 1  ;;  %v1044_v42 = vsel %vm279_vm2, %v1042_v4, %v1043_v51 }
 0x14e   :  { %v379_v38 = vsel %vm368_vm5, %v354_v7, -inf  ;;  %v296_v43 = vrot.slane %v2070_v52, 2 }
 0x14f   :  { %v798_v12 = vsel %vm368_vm5, %v774_v15, -inf  ;;  %v381_v35 = vmax.f32 %v379_v38, %v380_v37  ;;  %v796_v7 = vrot.slane %v795_v3, 1  ;;  %v208_v37 = vsel %vm190_vm1, %v206_v39, %v207_v29 }
 0x150   :  { %v800_v21 = vmax.f32 %v798_v12, %v799_v19 }
 0x151   :  { %982 = vrot.lane.b32.xlu2 %v956_v16, %s1632_s23  ;;  %v382_v27 = vrot.slane %v381_v35, 4  ;;  %1072 = vrot.lane.b32.xlu0 %v1043_v51, %s1631_s22  ;;  %v626_v16 = vrot.slane %v2030_v48, 2 }
 0x152   :  { %v801_v57 = vrot.slane %v800_v21, 4  ;;  %569 = vrot.lane.b32.xlu1 %v539_v26, %s1632_s23 }
 0x153   :  { %v2076_v55 = vpop.permute.xlu2 %645  ;;  %v383_v59 = vmax.f32 %v381_v35, %v382_v27  ;;  %v2081_v32 = vpop.permute.xlu0 %1058  ;;  %v797_v35 = vmax.f32 %v795_v3, %v796_v7  ;;  %v378_v27 = vmax.f32 %v376_v28, %v377_v40  ;;  %v268_v40 = vadd.f32 %v2059_v11, %v1870_v30 }
 0x154   :  { %v802_v5 = vmax.f32 %v800_v21, %v801_v57  ;;  %v1061_v46 = vpop.permute.xlu1 %1060  ;;  %v2101_v7 = vpop.f32.mrf.mxu2 }
 0x155   :  { %v1105_v15 = vadd.f32 %v1061_v46, %v1017_v61  ;;  %v384_v33 = vrot.slane %v383_v59, 2 }
 0x156   :  { %v803_v44 = vrot.slane %v802_v5, 2 }
 0x157   :  { %v385_v12 = vmax.f32 %v383_v59, %v384_v33  ;;  %v538_v59 = vrot.slane %v2030_v48, 1 }
 0x158   :  { %v804_v19 = vmax.f32 %v802_v5, %v803_v44  ;;  %v627_v5 = vrot.slane %v2054_v22, 2 }
 0x159   :  { %1070 = vrot.lane.b32.xlu2 %v1044_v42, %s1631_s22  ;;  %v386_v21 = vrot.slane %v385_v12, 1  ;;  %326 = vrot.lane.b32.xlu0 %v296_v43, %s1631_s22  ;;  %v2109_v42 = vpop.f32.mrf.mxu0 }
 0x15a   :  { %v805_v38 = vrot.slane %v804_v19, 1  ;;  %235 = vrot.lane.b32.xlu1 %v208_v37, %s1632_s23  ;;  %v628_v3 = vsel %vm279_vm2, %v626_v16, %v627_v5 }
 0x15b   :  { %v224_v61 = vpop.permute.xlu2 %223  ;;  %v387_v46 = vmax.f32 %v385_v12, %v386_v21  ;;  %v1147_v4 = vpop.permute.xlu0 %1146 }
 0x15c   :  { %v806_v57 = vmax.f32 %v804_v19, %v805_v38  ;;  %v1149_v51 = vpop.permute.xlu1 %1148  ;;  %v540_v19 = vsel %vm190_vm1, %v538_v59, %v539_v26  ;;  %v267_v28 = vadd.f32 %v224_v61, %v1857_v20 }
 0x15d   :  { %v2093_v39 = vadd.f32 %v1149_v51, %v1105_v15  ;;  %v1377_v33 = vsel %vm1376_vm7, %v387_v46, %v378_v27  ;;  %v2107_v15 = vpop.f32.mrf.mxu1  ;;  %v295_v27 = vrot.slane %v2046_v58, 2 }
 0x15e   :  { %v2097_v44 = vsel %vm1376_vm7, %v806_v57, %v797_v35  ;;  %v958_v35 = vrot.slane %v2101_v7, 1 }
 0x161   :  { %237 = vrot.lane.b32.xlu2 %v207_v29, %s1632_s23  ;;  %567 = vrot.lane.b32.xlu0 %v540_v19, %s1632_s23  ;;  %v957_v29 = vrot.slane %v2083_v49, 1  ;;  %v2125_v59 = vpop.f32.mrf.mxu0 }
 0x162   :  { %655 = vrot.lane.b32.xlu1 %v628_v3, %s1631_s22 }
 0x163   :  { %v313_v37 = vpop.permute.xlu2 %312  ;;  %v315_v38 = vpop.permute.xlu0 %314  ;;  %v959_v51 = vsel %vm190_vm1, %v957_v29, %v958_v35 }
 0x164   :  { %v2114_v12 = vpop.permute.xlu1 %575  ;;  %v356_v26 = vadd.f32 %v313_v37, %v267_v28  ;;  %v357_v21 = vadd.f32 %v315_v38, %v268_v40  ;;  %v210_v37 = vrot.slane %v2125_v59, 1 }
 0x165   :  { %2545 = vst [vmem:[#allocation7_spill] sm:$0xff] %v2114_v12  ;;  %v2128_v28 = vpop.f32.mrf.mxu1 }
 0x166   :  { %v388_v20 = vsel %vm368_vm5, %v356_v26, -inf  ;;  %v389_v16 = vsel %vm370_vm4, %v357_v21, -inf  ;;  %v542_v26 = vrot.slane %v2128_v28, 1  ;;  %v297_v21 = vsel %vm279_vm2, %v295_v27, %v296_v43 }
 0x167   :  { %v390_v57 = vmax.f32 %v388_v20, %v389_v16  ;;  %v630_v27 = vrot.slane %v2128_v28, 2 }
 0x169   :  { %657 = vrot.lane.b32.xlu2 %v627_v5, %s1631_s22  ;;  %v391_v30 = vrot.slane %v390_v57, 4  ;;  %986 = vrot.lane.b32.xlu0 %v959_v51, %s1632_s23 }
 0x16a   :  { %988 = vrot.lane.b32.xlu1 %v958_v35, %s1632_s23 }
 0x16b   :  { %v1065_v61 = vpop.permute.xlu2 %1064  ;;  %v392_v46 = vmax.f32 %v390_v57, %v391_v30  ;;  %v556_v19 = vpop.permute.xlu0 %555  ;;  %v209_v30 = vrot.slane %v2109_v42, 1 }
 0x16c   :  { %v971_v11 = vpop.permute.xlu1 %970 }
 0x16d   :  { %v1016_v3 = vadd.f32 %v971_v11, %v1829_v63  ;;  %v393_v40 = vrot.slane %v392_v46, 2 }
 0x16f   :  { %v1104_v5 = vadd.f32 %v2081_v32, %v1016_v3  ;;  %v394_v38 = vmax.f32 %v392_v46, %v393_v40  ;;  %v2151_v46 = vpop.f32.mrf.mxu2  ;;  %v211_v3 = vsel %vm190_vm1, %v209_v30, %v210_v37  ;;  %v599_v40 = vadd.f32 %v556_v19, %v1862_v24 }
 0x171   :  { %324 = vrot.lane.b32.xlu2 %v297_v21, %s1631_s22  ;;  %v395_v29 = vrot.slane %v394_v38, 1  ;;  %573 = vrot.lane.b32.xlu0 %v542_v26, %s1632_s23  ;;  %v2137_v35 = vadd.f32 %v1147_v4, %v1104_v5  ;;  %v299_v4 = vrot.slane %v2125_v59, 2 }
 0x172   :  { %241 = vrot.lane.b32.xlu1 %v210_v37, %s1632_s23 }
 0x173   :  { %v2139_v16 = vpop.permute.xlu2 %318  ;;  %v396_v32 = vmax.f32 %v394_v38, %v395_v29  ;;  %v975_v51 = vpop.permute.xlu0 %974  ;;  %v298_v38 = vrot.slane %v2109_v42, 2 }
 0x174   :  { %v558_v20 = vpop.permute.xlu1 %557 }
 0x175   :  { %v600_v57 = vadd.f32 %v558_v20, %v1877_v36  ;;  %v2144_v43 = vsel %vm1378_vm8, %v396_v32, %v1377_v33  ;;  %v629_v20 = vrot.slane %v2107_v15, 2  ;;  %v2165_v32 = vpop.f32.mrf.mxu3  ;;  %v300_v19 = vsel %vm279_vm2, %v298_v38, %v299_v4 }
 0x177   :  { %v2147_v11 = vadd.f32 %v2076_v55, %v600_v57  ;;  %v541_v55 = vrot.slane %v2107_v15, 1  ;;  %v631_v57 = vsel %vm279_vm2, %v629_v20, %v630_v27  ;;  %v2172_v30 = vpop.f32.mrf.mxu2 }
 0x179   :  { %330 = vrot.lane.b32.xlu2 %v299_v4, %s1631_s22  ;;  %239 = vrot.lane.b32.xlu0 %v211_v3, %s1632_s23  ;;  %v543_v37 = vsel %vm190_vm1, %v541_v55, %v542_v26  ;;  %v961_v26 = vrot.slane %v2172_v30, 1  ;;  %v960_v4 = vrot.slane %v2151_v46, 1 }
 0x17a   :  { %661 = vrot.lane.b32.xlu1 %v630_v27, %s1631_s22  ;;  %v2546_v27 = vrot.slane %v1892_v45, 3 }
 0x17b   :  { %v560_v5 = vpop.permute.xlu2 %559  ;;  %v2162_v29 = vpop.permute.xlu0 %561  ;;  %v962_v20 = vsel %vm190_vm1, %v960_v4, %v961_v26 }
 0x17c   :  { %v644_v33 = vpop.permute.xlu1 %643 }
 0x17d   :  { %v2160_v21 = vadd.f32 %v644_v33, %v599_v40  ;;  %v2182_v38 = vpop.f32.mrf.mxu3 }
 0x181   :  { %571 = vrot.lane.b32.xlu2 %v543_v37, %s1632_s23  ;;  %659 = vrot.lane.b32.xlu0 %v631_v57, %s1631_s22  ;;  %v1018_v37 = vadd.f32 %v975_v51, %v1874_v34  ;;  %v963_v57 = vrot.slane %v2165_v32, 1  ;;  %v707_v51 = vrot.slane %v1877_v36, 3 }
 0x182   :  { %328 = vrot.lane.b32.xlu1 %v300_v19, %s1631_s22 }
 0x183   :  { %v979_v40 = vpop.permute.xlu2 %978  ;;  %v2176_v54 = vpop.permute.xlu0 %227 }
 0x184   :  { %v977_v3 = vpop.permute.xlu1 %976  ;;  %v1020_v19 = vadd.f32 %v979_v40, %v1933_v25 }
 0x185   :  { %v1019_v33 = vadd.f32 %v977_v3, %v1892_v45  ;;  %v601_v3 = vadd.f32 %v560_v5, %v1895_v47 }
 0x187   :  { %v2180_v55 = vadd.f32 %v1065_v61, %v1019_v33  ;;  %v964_v61 = vrot.slane %v2182_v38, 1 }
 0x189   :  { %1152 = vrot.lane.b32.xlu2 %v2546_v27, %s1633_s24  ;;  %990 = vrot.lane.b32.xlu0 %v962_v20, %s1632_s23  ;;  %v965_v40 = vsel %vm190_vm1, %v963_v57, %v964_v61  ;;  %vm1453_vm1 = vcmask 195584  }
 0x18a   :  { %992 = vrot.lane.b32.xlu1 %v961_v26, %s1632_s23  ;;  %v706_v26 = vrot.slane %v1862_v24, 3  ;;  %v1046_v24 = vrot.slane %v2101_v7, 2 }
 0x18b   :  { %v1067_v12 = vpop.permute.xlu2 %1066  ;;  %v648_v8 = vpop.permute.xlu0 %647 }
 0x18c   :  { %v1063_v33 = vpop.permute.xlu1 %1062  ;;  %v2195_v27 = vadd.f32 %v1067_v12, %v1020_v19  ;;  %v2198_v4 = vadd.f32 %v648_v8, %v601_v3  ;;  %v708_v5 = vsel %vm699_vm3, %v706_v26, %v707_v51  ;;  %v1045_v8 = vrot.slane %v2083_v49, 2 }
 0x18d   :  { %v1106_v1 = vadd.f32 %v1063_v33, %v1018_v37 }
 0x18e   :  { %v1047_v36 = vsel %vm279_vm2, %v1045_v8, %v1046_v24 }
 0x191   :  { %994 = vrot.lane.b32.xlu2 %v965_v40, %s1632_s23  ;;  %732 = vrot.lane.b32.xlu0 %v708_v5, %s1633_s24  ;;  %v1208_v40 = vrot.slane %v1764_v31, 4  ;;  %v602_v31 = vadd.f32 %v2162_v29, %v1913_v62  ;;  %v269_v29 = vadd.f32 %v2176_v54, %v1902_v53 }
 0x192   :  { %734 = vrot.lane.b32.xlu1 %v707_v51, %s1633_s24  ;;  %v1207_v51 = vrot.slane %v1751_v23, 4 }
 0x193   :  { %v566_v12 = vpop.permute.xlu2 %565  ;;  %v981_v19 = vpop.permute.xlu0 %980 }
 0x194   :  { %v1151_v20 = vpop.permute.xlu1 %1150  ;;  %v1021_v57 = vadd.f32 %v981_v19, %v1953_v56  ;;  %v1209_v19 = vsel %vm1206_vm9, %v1207_v51, %v1208_v40 }
 0x195   :  { %v2206_v37 = vadd.f32 %v1151_v20, %v1106_v1  ;;  %v1128_v20 = vrot.slane %v1953_v56, 3 }
 0x199   :  { %1076 = vrot.lane.b32.xlu2 %v1046_v24, %s1631_s22  ;;  %996 = vrot.lane.b32.xlu0 %v964_v61, %s1632_s23  ;;  %v1127_v24 = vrot.slane %v1933_v25, 3 }
 0x19a   :  { %1074 = vrot.lane.b32.xlu1 %v1047_v36, %s1631_s22 }
 0x19b   :  { %v232_v33 = vpop.permute.xlu2 %231  ;;  %v1069_v26 = vpop.permute.xlu0 %1068  ;;  %v1129_v23 = vsel %vm699_vm3, %v1127_v24, %v1128_v20  ;;  %v1049_v24 = vrot.slane %v2172_v30, 2 }
 0x19c   :  { %v230_v3 = vpop.permute.xlu1 %229  ;;  %v2218_v5 = vadd.f32 %v1069_v26, %v1021_v57  ;;  %v1211_v57 = vrot.slane %v1846_v9, 4  ;;  %v604_v26 = vadd.f32 %v566_v12, %v2000_v0 }
 0x19d   :  { %v270_v1 = vadd.f32 %v230_v3, %v1921_v6  ;;  %v1210_v3 = vrot.slane %v1829_v63, 4  ;;  %v1048_v63 = vrot.slane %v2151_v46, 2 }
 0x19f   :  { %v359_v61 = vadd.f32 %v2139_v16, %v270_v1  ;;  %v1212_v1 = vsel %vm1206_vm9, %v1210_v3, %v1211_v57  ;;  %v1050_v12 = vsel %vm279_vm2, %v1048_v63, %v1049_v24  ;;  %v1131_v63 = vrot.slane %v2042_v60, 3 }
 0x1a1   :  { %1231 = vrot.lane.b32.xlu2 %v1209_v19, %s1634_s0  ;;  %1154 = vrot.lane.b32.xlu0 %v1129_v23, %s1633_s24  ;;  %v709_v23 = vrot.slane %v1895_v47, 3  ;;  %v398_v53 = vsel %vm370_vm4, %v359_v61, -inf }
 0x1a2   :  { %1156 = vrot.lane.b32.xlu1 %v1128_v20, %s1633_s24 }
 0x1a3   :  { %v2230_v8 = vpop.permute.xlu2 %651  ;;  %v234_v16 = vpop.permute.xlu0 %233 }
 0x1a4   :  { %v650_v6 = vpop.permute.xlu1 %649  ;;  %v272_v47 = vadd.f32 %v234_v16, %v1990_v50 }
 0x1a5   :  { %v2232_v36 = vadd.f32 %v650_v6, %v602_v31  ;;  %v710_v6 = vrot.slane %v1913_v62, 3  ;;  %v271_v62 = vadd.f32 %v232_v33, %v1967_v14 }
 0x1a7   :  { %v711_v3 = vsel %vm699_vm3, %v709_v23, %v710_v6 }
 0x1a9   :  { %1237 = vrot.lane.b32.xlu2 %v1211_v57, %s1634_s0  ;;  %1233 = vrot.lane.b32.xlu0 %v1208_v40, %s1634_s0 }
 0x1aa   :  { %1235 = vrot.lane.b32.xlu1 %v1212_v1, %s1634_s0 }
 0x1ab   :  { %v983_v20 = vpop.permute.xlu2 %982  ;;  %v654_v19 = vpop.permute.xlu0 %653 }
 0x1ac   :  { %v317_v51 = vpop.permute.xlu1 %316  ;;  %v2246_v31 = vadd.f32 %v654_v19, %v604_v26  ;;  %v1022_v1 = vadd.f32 %v983_v20, %v2016_v17 }
 0x1ad   :  { %v358_v9 = vadd.f32 %v317_v51, %v269_v29 }
 0x1af   :  { %v397_v54 = vsel %vm368_vm5, %v358_v9, -inf }
 0x1b0   :  { %v399_v40 = vmax.f32 %v397_v54, %v398_v53  ;;  %v1130_v53 = vrot.slane %v2016_v17, 3 }
 0x1b1   :  { %1078 = vrot.lane.b32.xlu2 %v1050_v12, %s1631_s22  ;;  %736 = vrot.lane.b32.xlu0 %v711_v3, %s1633_s24 }
 0x1b2   :  { %v400_v57 = vrot.slane %v399_v40, 4  ;;  %738 = vrot.lane.b32.xlu1 %v710_v6, %s1633_s24  ;;  %v1132_v14 = vsel %vm699_vm3, %v1130_v53, %v1131_v63 }
 0x1b3   :  { %v1071_v26 = vpop.permute.xlu2 %1070  ;;  %v321_v9 = vpop.permute.xlu0 %320 }
 0x1b4   :  { %v401_v61 = vmax.f32 %v399_v40, %v400_v57  ;;  %v323_v29 = vpop.permute.xlu1 %322  ;;  %v2259_v19 = vadd.f32 %v1071_v26, %v1022_v1  ;;  %v360_v6 = vadd.f32 %v321_v9, %v271_v62  ;;  %v713_v1 = vrot.slane %v2000_v0, 3 }
 0x1b5   :  { %v361_v51 = vadd.f32 %v323_v29, %v272_v47  ;;  %v712_v47 = vrot.slane %v1986_v41, 3  ;;  %v1214_v26 = vrot.slane %v1892_v45, 4 }
 0x1b6   :  { %v402_v23 = vrot.slane %v401_v61, 2  ;;  %v406_v20 = vsel %vm368_vm5, %v360_v6, -inf }
 0x1b7   :  { %v407_v50 = vsel %vm370_vm4, %v361_v51, -inf  ;;  %v1213_v51 = vrot.slane %v1874_v34, 4 }
 0x1b8   :  { %v403_v16 = vmax.f32 %v401_v61, %v402_v23  ;;  %v408_v54 = vmax.f32 %v406_v20, %v407_v50  ;;  %v714_v23 = vsel %vm699_vm3, %v712_v47, %v713_v1  ;;  %v1051_v20 = vrot.slane %v2165_v32, 2 }
 0x1b9   :  { %1160 = vrot.lane.b32.xlu2 %v1131_v63, %s1633_s24  ;;  %1080 = vrot.lane.b32.xlu0 %v1049_v24, %s1631_s22 }
 0x1ba   :  { %v404_v33 = vrot.slane %v403_v16, 1  ;;  %1158 = vrot.lane.b32.xlu1 %v1132_v14, %s1633_s24  ;;  %v409_v40 = vrot.slane %v408_v54, 4 }
 0x1bb   :  { %v238_v3 = vpop.permute.xlu2 %237  ;;  %v985_v29 = vpop.permute.xlu0 %984 }
 0x1bc   :  { %v405_v12 = vmax.f32 %v403_v16, %v404_v33  ;;  %v564_v57 = vpop.permute.xlu1 %563  ;;  %v410_v62 = vmax.f32 %v408_v54, %v409_v40  ;;  %v1023_v34 = vadd.f32 %v985_v29, %v2042_v60  ;;  %v1052_v16 = vrot.slane %v2182_v38, 2 }
 0x1bd   :  { %v603_v61 = vadd.f32 %v564_v57, %v1986_v41  ;;  %v1215_v41 = vsel %vm1206_vm9, %v1213_v51, %v1214_v26  ;;  %v1216_v29 = vrot.slane %v1933_v25, 4 }
 0x1be   :  { %v1381_v9 = vsel %vm1380_vm10, %v405_v12, %v2144_v43  ;;  %v411_v24 = vrot.slane %v410_v62, 2  ;;  %v1053_v40 = vsel %vm279_vm2, %v1051_v20, %v1052_v16  ;;  %v274_v12 = vadd.f32 %v238_v3, %v2070_v52 }
 0x1bf   :  { %v2277_v63 = vadd.f32 %v2230_v8, %v603_v61 }
 0x1c0   :  { %v412_v53 = vmax.f32 %v410_v62, %v411_v24  ;;  %v1133_v24 = vrot.slane %v2083_v49, 3 }
 0x1c1   :  { %740 = vrot.lane.b32.xlu2 %v714_v23, %s1633_s24  ;;  %1239 = vrot.lane.b32.xlu0 %v1215_v41, %s1634_s0 }
 0x1c2   :  { %1241 = vrot.lane.b32.xlu1 %v1214_v26, %s1634_s0  ;;  %v413_v0 = vrot.slane %v412_v53, 1  ;;  %v1217_v26 = vrot.slane %v1953_v56, 4 }
 0x1c3   :  { %v658_v43 = vpop.permute.xlu2 %657  ;;  %v1073_v50 = vpop.permute.xlu0 %1072 }
 0x1c4   :  { %v570_v45 = vpop.permute.xlu1 %569  ;;  %v414_v6 = vmax.f32 %v412_v53, %v413_v0  ;;  %v2288_v54 = vadd.f32 %v1073_v50, %v1023_v34  ;;  %v1218_v52 = vsel %vm1206_vm9, %v1216_v29, %v1217_v26  ;;  %v632_v0 = vrot.slane %v1833_v2, 2 }
 0x1c5   :  { %v606_v8 = vadd.f32 %v570_v45, %v2054_v22  ;;  %v633_v45 = vrot.slane %v1849_v10, 2  ;;  %v715_v29 = vrot.slane %v2030_v48, 3 }
 0x1c6   :  { %v1383_v33 = vsel %vm1382_vm11, %v414_v6, %v1381_v9  ;;  %v1134_v9 = vrot.slane %v2101_v7, 3 }
 0x1c7   :  { %v2290_v14 = vadd.f32 %v658_v43, %v606_v8 }
 0x1c8   :  { %v1135_v25 = vsel %vm699_vm3, %v1133_v24, %v1134_v9 }
 0x1c9   :  { %1084 = vrot.lane.b32.xlu2 %v1052_v16, %s1631_s22  ;;  %742 = vrot.lane.b32.xlu0 %v713_v1, %s1633_s24  ;;  %v634_v16 = vsel %vm279_vm2, %v632_v0, %v633_v45 }
 0x1ca   :  { %1082 = vrot.lane.b32.xlu1 %v1053_v40, %s1631_s22 }
 0x1cb   :  { %v325_v57 = vpop.permute.xlu2 %324  ;;  %v327_v62 = vpop.permute.xlu0 %326 }
 0x1cc   :  { %v236_v47 = vpop.permute.xlu1 %235  ;;  %v363_v51 = vadd.f32 %v327_v62, %v274_v12 }
 0x1cd   :  { %v273_v61 = vadd.f32 %v236_v47, %v2046_v58  ;;  %v1137_v47 = vrot.slane %v2172_v30, 3 }
 0x1ce   :  { %v416_v23 = vsel %vm370_vm4, %v363_v51, -inf }
 0x1cf   :  { %v362_v53 = vadd.f32 %v325_v57, %v273_v61  ;;  %v1136_v61 = vrot.slane %v2151_v46, 3 }
 0x1d1   :  { %v415_v1 = vsel %vm368_vm5, %v362_v53, -inf  ;;  %1243 = vrot.lane.b32.xlu2 %v1218_v52, %s1634_s0  ;;  %1162 = vrot.lane.b32.xlu0 %v1135_v25, %s1633_s24 }
 0x1d2   :  { %v417_v3 = vmax.f32 %v415_v1, %v416_v23  ;;  %1164 = vrot.lane.b32.xlu1 %v1134_v9, %s1633_s24  ;;  %v716_v9 = vrot.slane %v2054_v22, 3 }
 0x1d3   :  { %v331_v41 = vpop.permute.xlu2 %330  ;;  %v568_v34 = vpop.permute.xlu0 %567 }
 0x1d4   :  { %v418_v56 = vrot.slane %v417_v3, 4  ;;  %v656_v58 = vpop.permute.xlu1 %655  ;;  %v605_v6 = vadd.f32 %v568_v34, %v2030_v48  ;;  %v717_v53 = vsel %vm699_vm3, %v715_v29, %v716_v9 }
 0x1d6   :  { %v419_v43 = vmax.f32 %v417_v3, %v418_v56  ;;  %v2313_v50 = vadd.f32 %v656_v58, %v605_v6  ;;  %v1219_v3 = vrot.slane %v2016_v17, 4  ;;  %v1140_v17 = vrot.slane %v2182_v38, 3 }
 0x1d8   :  { %v420_v8 = vrot.slane %v419_v43, 2 }
 0x1d9   :  { %665 = vrot.lane.b32.xlu2 %v633_v45, %s1631_s22  ;;  %1245 = vrot.lane.b32.xlu0 %v1217_v26, %s1634_s0  ;;  %v1138_v26 = vsel %vm699_vm3, %v1136_v61, %v1137_v47  ;;  %v719_v45 = vrot.slane %v2128_v28, 3 }
 0x1da   :  { %v421_v20 = vmax.f32 %v419_v43, %v420_v8  ;;  %663 = vrot.lane.b32.xlu1 %v634_v16, %s1631_s22  ;;  %v436_v43 = vrot.slane %v2028_v13, 4 }
 0x1db   :  { %v572_v57 = vpop.permute.xlu2 %571  ;;  %v2320_v62 = vpop.permute.xlu0 %986 }
 0x1dc   :  { %v422_v40 = vrot.slane %v421_v20, 1  ;;  %v989_v12 = vpop.permute.xlu1 %988 }
 0x1dd   :  { %v1025_v16 = vadd.f32 %v989_v12, %v2101_v7 }
 0x1de   :  { %v423_v51 = vmax.f32 %v421_v20, %v422_v40  ;;  %v437_v40 = vmax.f32 %v2028_v13, %v436_v43 }
 0x1e0   :  { %v2326_v24 = vsel %vm1384_vm12, %v423_v51, %v1383_v33  ;;  %v1220_v33 = vrot.slane %v2042_v60, 4  ;;  %v1139_v60 = vrot.slane %v2165_v32, 3 }
 0x1e1   :  { %1166 = vrot.lane.b32.xlu2 %v1138_v26, %s1633_s24  ;;  %744 = vrot.lane.b32.xlu0 %v717_v53, %s1633_s24  ;;  %v1223_v26 = vrot.slane %v2101_v7, 4  ;;  %v1222_v53 = vrot.slane %v2083_v49, 4 }
 0x1e2   :  { %746 = vrot.lane.b32.xlu1 %v716_v9, %s1633_s24  ;;  %v1221_v56 = vsel %vm1206_vm9, %v1219_v3, %v1220_v33  ;;  %v1141_v6 = vsel %vm699_vm3, %v1139_v60, %v1140_v17  ;;  %v1226_v3 = vrot.slane %v2172_v30, 4  ;;  %v722_v60 = vrot.slane %v1849_v10, 3 }
 0x1e3   :  { %v1153_v23 = vpop.permute.xlu2 %1152  ;;  %v574_v52 = vpop.permute.xlu0 %573 }
 0x1e4   :  { %v242_v1 = vpop.permute.xlu1 %241  ;;  %v2334_v48 = vadd.f32 %v1153_v23, %v2180_v55  ;;  %v608_v58 = vadd.f32 %v574_v52, %v2128_v28  ;;  %v607_v28 = vadd.f32 %v572_v57, %v2107_v15 }
 0x1e5   :  { %v276_v22 = vadd.f32 %v242_v1, %v2125_v59  ;;  %v438_v1 = vrot.slane %v437_v40, 2 }
 0x1e7   :  { %v365_v25 = vadd.f32 %v331_v41, %v276_v22  ;;  %v718_v41 = vrot.slane %v2107_v15, 3  ;;  %v1224_v15 = vsel %vm1206_vm9, %v1222_v53, %v1223_v26  ;;  %v439_v7 = vmax.f32 %v437_v40, %v438_v1 }
 0x1e9   :  { %1249 = vrot.lane.b32.xlu2 %v1220_v33, %s1634_s0  ;;  %1168 = vrot.lane.b32.xlu0 %v1137_v47, %s1633_s24  ;;  %v720_v8 = vsel %vm699_vm3, %v718_v41, %v719_v45  ;;  %v440_v41 = vrot.slane %v439_v7, 1 }
 0x1ea   :  { %1247 = vrot.lane.b32.xlu1 %v1221_v56, %s1634_s0 }
 0x1eb   :  { %v2344_v0 = vpop.permute.xlu2 %994  ;;  %v240_v59 = vpop.permute.xlu0 %239 }
 0x1ec   :  { %v662_v55 = vpop.permute.xlu1 %661  ;;  %v275_v20 = vadd.f32 %v240_v59, %v2109_v42  ;;  %v425_v42 = vsel %vm370_vm4, %v365_v25, -inf }
 0x1ed   :  { %v2346_v34 = vadd.f32 %v662_v55, %v608_v58  ;;  %v1225_v58 = vrot.slane %v2151_v46, 4  ;;  %v721_v55 = vrot.slane %v1833_v2, 3 }
 0x1f1   :  { %1170 = vrot.lane.b32.xlu2 %v1141_v6, %s1633_s24  ;;  %748 = vrot.lane.b32.xlu0 %v720_v8, %s1633_s24  ;;  %v723_v6 = vsel %vm699_vm3, %v721_v55, %v722_v60 }
 0x1f2   :  { %750 = vrot.lane.b32.xlu1 %v719_v45, %s1633_s24 }
 0x1f3   :  { %v1077_v47 = vpop.permute.xlu2 %1076  ;;  %v660_v9 = vpop.permute.xlu0 %659 }
 0x1f4   :  { %v329_v61 = vpop.permute.xlu1 %328  ;;  %v2362_v29 = vadd.f32 %v1077_v47, %v1025_v16  ;;  %v2366_v23 = vadd.f32 %v660_v9, %v607_v28 }
 0x1f5   :  { %v364_v51 = vadd.f32 %v329_v61, %v275_v20  ;;  %v441_v20 = vmax.f32 %v439_v7, %v440_v41  ;;  %v1229_v61 = vrot.slane %v2182_v38, 4 }
 0x1f7   :  { %v424_v12 = vsel %vm368_vm5, %v364_v51, -inf  ;;  %v1228_v51 = vrot.slane %v2165_v32, 4 }
 0x1f8   :  { %v426_v13 = vmax.f32 %v424_v12, %v425_v42 }
 0x1f9   :  { %1253 = vrot.lane.b32.xlu2 %v1223_v26, %s1634_s0  ;;  %1172 = vrot.lane.b32.xlu0 %v1140_v17, %s1633_s24  ;;  %v1227_v17 = vsel %vm1206_vm9, %v1225_v58, %v1226_v3 }
 0x1fa   :  { %v427_v57 = vrot.slane %v426_v13, 4  ;;  %1251 = vrot.lane.b32.xlu1 %v1224_v15, %s1634_s0 }
 0x1fb   :  { %v1232_v22 = vpop.permute.xlu2 %1231  ;;  %v991_v56 = vpop.permute.xlu0 %990 }
 0x1fc   :  { %v428_v52 = vmax.f32 %v426_v13, %v427_v57  ;;  %v2374_v33 = vpop.permute.xlu1 %992  ;;  %v1279_v25 = vadd.f32 %v1232_v22, %v1974_v18  ;;  %v1026_v1 = vadd.f32 %v991_v56, %v2151_v46 }
 0x1fe   :  { %v429_v59 = vrot.slane %v428_v52, 2 }
 0x200   :  { %v430_v45 = vmax.f32 %v428_v52, %v429_v59 }
 0x201   :  { %1255 = vrot.lane.b32.xlu2 %v1227_v17, %s1634_s0  ;;  %752 = vrot.lane.b32.xlu0 %v723_v6, %s1633_s24 }
 0x202   :  { %v431_v43 = vrot.slane %v430_v45, 1  ;;  %754 = vrot.lane.b32.xlu1 %v722_v60, %s1633_s24 }
 0x203   :  { %v1238_v8 = vpop.permute.xlu2 %1237  ;;  %v733_v47 = vpop.permute.xlu0 %732 }
 0x204   :  { %v432_v18 = vmax.f32 %v430_v45, %v431_v43  ;;  %v735_v16 = vpop.permute.xlu1 %734  ;;  %v1282_v40 = vadd.f32 %v1238_v8, %v2093_v39  ;;  %v776_v9 = vadd.f32 %v733_v47, %v2160_v21  ;;  %v1024_v21 = vadd.f32 %v2320_v62, %v2083_v49 }
 0x205   :  { %v777_v28 = vadd.f32 %v735_v16, %v2147_v11  ;;  %v1230_v11 = vsel %vm1206_vm9, %v1228_v51, %v1229_v61 }
 0x206   :  { %v1387_v26 = vsel %vm1386_vm13, %v432_v18, %v2326_v24  ;;  %v807_v12 = vsel %vm368_vm5, %v776_v9, -inf  ;;  %v2547_v18 = vld [vmem:[#allocation5_spill] sm:$0xff] }
 0x207   :  { %v808_v53 = vsel %vm789_vm6, %v777_v28, -inf  ;;  %v2395_v42 = vsel %vm1388_vm14, %v441_v20, %v1387_v26 }
 0x208   :  { %v809_v39 = vmax.f32 %v807_v12, %v808_v53 }
 0x209   :  { %1261 = vrot.lane.b32.xlu2 %v1229_v61, %s1634_s0  ;;  %1257 = vrot.lane.b32.xlu0 %v1226_v3, %s1634_s0 }
 0x20a   :  { %1259 = vrot.lane.b32.xlu1 %v1230_v11, %s1634_s0  ;;  %v810_v24 = vrot.slane %v809_v39, 4 }
 0x20b   :  { %v1079_v13 = vpop.permute.xlu2 %1078  ;;  %v2409_v22 = vpop.permute.xlu0 %996 }
 0x20c   :  { %v1075_v15 = vpop.permute.xlu1 %1074  ;;  %v811_v57 = vmax.f32 %v809_v39, %v810_v24  ;;  %v2405_v7 = vadd.f32 %v1079_v13, %v1026_v1 }
 0x20d   :  { %v2407_v52 = vadd.f32 %v1075_v15, %v1024_v21 }
 0x20e   :  { %v812_v58 = vrot.slane %v811_v57, 2 }
 0x210   :  { %v813_v55 = vmax.f32 %v811_v57, %v812_v58 }
 0x212   :  { %v814_v59 = vrot.slane %v813_v55, 1 }
 0x213   :  { %v1161_v60 = vpop.permute.xlu2 %1160  ;;  %v1155_v3 = vpop.permute.xlu0 %1154 }
 0x214   :  { %v1157_v41 = vpop.permute.xlu1 %1156  ;;  %v815_v49 = vmax.f32 %v813_v55, %v814_v59  ;;  %v2412_v46 = vadd.f32 %v1161_v60, %v2288_v54  ;;  %v2418_v56 = vadd.f32 %v1155_v3, %v2195_v27  ;;  %v1306_v54 = vsel %vm1296_vm15, %v1282_v40, -inf }
 0x215   :  { %v2415_v62 = vadd.f32 %v1157_v41, %v2218_v5  ;;  %v1295_v5 = vsel %vm368_vm5, %v1279_v25, -inf }
 0x216   :  { %v1400_v45 = vsel %vm1378_vm8, %v815_v49, %v2097_v44 }
 0x21b   :  { %v1234_v6 = vpop.permute.xlu0 %1233  ;;  %v741_v20 = vpop.permute.xlu2 %740 }
 0x21c   :  { %v1236_v17 = vpop.permute.xlu1 %1235  ;;  %v1280_v8 = vadd.f32 %v1234_v6, %v2547_v18 }
 0x21d   :  { %v1281_v43 = vadd.f32 %v1236_v17, %v2137_v35 }
 0x21e   :  { %v1297_v27 = vsel %vm1296_vm15, %v1280_v8, -inf }
 0x21f   :  { %v1305_v16 = vsel %vm368_vm5, %v1281_v43, -inf  ;;  %v1298_v47 = vmax.f32 %v1295_v5, %v1297_v27 }
 0x220   :  { %v1307_v28 = vmax.f32 %v1305_v16, %v1306_v54 }
 0x221   :  { %v1299_v44 = vrot.slane %v1298_v47, 4 }
 0x222   :  { %v1308_v61 = vrot.slane %v1307_v28, 4 }
 0x223   :  { %v1300_v26 = vmax.f32 %v1298_v47, %v1299_v44  ;;  %v737_v53 = vpop.permute.xlu0 %736  ;;  %v2432_v15 = vpop.permute.xlu2 %1084  ;;  %v780_v44 = vadd.f32 %v741_v20, %v2277_v63 }
 0x224   :  { %v1309_v51 = vmax.f32 %v1307_v28, %v1308_v61  ;;  %v739_v9 = vpop.permute.xlu1 %738  ;;  %v778_v40 = vadd.f32 %v737_v53, %v2198_v4 }
 0x225   :  { %v779_v35 = vadd.f32 %v739_v9, %v2232_v36  ;;  %v1301_v39 = vrot.slane %v1300_v26, 2  ;;  %v1027_v36 = vadd.f32 %v2374_v33, %v2172_v30 }
 0x226   :  { %v1310_v12 = vrot.slane %v1309_v51, 2  ;;  %v816_v21 = vsel %vm368_vm5, %v778_v40, -inf }
 0x227   :  { %v817_v11 = vsel %vm789_vm6, %v779_v35, -inf  ;;  %v1302_v1 = vmax.f32 %v1300_v26, %v1301_v39 }
 0x228   :  { %v1311_v25 = vmax.f32 %v1309_v51, %v1310_v12  ;;  %v818_v24 = vmax.f32 %v816_v21, %v817_v11 }
 0x229   :  { %v1303_v57 = vrot.slane %v1302_v1, 1 }
 0x22a   :  { %v1312_v13 = vrot.slane %v1311_v25, 1  ;;  %v819_v58 = vrot.slane %v818_v24, 4 }
 0x22b   :  { %v1304_v60 = vmax.f32 %v1302_v1, %v1303_v57  ;;  %v1081_v49 = vpop.permute.xlu0 %1080  ;;  %v1244_v8 = vpop.permute.xlu2 %1243 }
 0x22c   :  { %v1313_v55 = vmax.f32 %v1311_v25, %v1312_v13  ;;  %v1159_v59 = vpop.permute.xlu1 %1158  ;;  %v820_v4 = vmax.f32 %v818_v24, %v819_v58  ;;  %v2439_v3 = vadd.f32 %v1081_v49, %v1027_v36  ;;  %v1285_v58 = vadd.f32 %v1244_v8, %v2418_v56 }
 0x22d   :  { %v2437_v41 = vadd.f32 %v1159_v59, %v2259_v19 }
 0x22e   :  { %v1417_v17 = vsel %vm1376_vm7, %v1313_v55, %v1304_v60  ;;  %v821_v43 = vrot.slane %v820_v4, 2  ;;  %v1323_v49 = vsel %vm368_vm5, %v1285_v58, -inf }
 0x230   :  { %v822_v6 = vmax.f32 %v820_v4, %v821_v43 }
 0x232   :  { %v823_v18 = vrot.slane %v822_v6, 1 }
 0x233   :  { %v1240_v33 = vpop.permute.xlu0 %1239  ;;  %v2450_v35 = vpop.permute.xlu2 %665 }
 0x234   :  { %v1242_v54 = vpop.permute.xlu1 %1241  ;;  %v824_v16 = vmax.f32 %v822_v6, %v823_v18  ;;  %v1283_v5 = vadd.f32 %v1240_v33, %v2206_v37  ;;  %v825_v37 = vsel %vm368_vm5, %v780_v44, -inf }
 0x235   :  { %v1284_v30 = vadd.f32 %v1242_v54, %v2334_v48 }
 0x236   :  { %v1401_v19 = vsel %vm1380_vm10, %v824_v16, %v1400_v45  ;;  %v1314_v27 = vsel %vm368_vm5, %v1283_v5, -inf }
 0x237   :  { %v1315_v28 = vsel %vm1296_vm15, %v1284_v30, -inf }
 0x238   :  { %v1316_v47 = vmax.f32 %v1314_v27, %v1315_v28 }
 0x23a   :  { %v1317_v61 = vrot.slane %v1316_v47, 4 }
 0x23b   :  { %v743_v26 = vpop.permute.xlu0 %742  ;;  %v2456_v13 = vpop.permute.xlu2 %1166 }
 0x23c   :  { %v2448_v51 = vpop.permute.xlu1 %1082  ;;  %v1318_v9 = vmax.f32 %v1316_v47, %v1317_v61  ;;  %v781_v48 = vadd.f32 %v743_v26, %v2246_v31 }
 0x23e   :  { %v1319_v53 = vrot.slane %v1318_v9, 2  ;;  %v826_v12 = vsel %vm789_vm6, %v781_v48, -inf }
 0x23f   :  { %v827_v40 = vmax.f32 %v825_v37, %v826_v12 }
 0x240   :  { %v1320_v45 = vmax.f32 %v1318_v9, %v1319_v53 }
 0x241   :  { %v828_v11 = vrot.slane %v827_v40, 4 }
 0x242   :  { %v1321_v39 = vrot.slane %v1320_v45, 1 }
 0x243   :  { %v829_v63 = vmax.f32 %v827_v40, %v828_v11  ;;  %v1163_v20 = vpop.permute.xlu0 %1162 }
 0x244   :  { %v1165_v25 = vpop.permute.xlu1 %1164  ;;  %v1322_v21 = vmax.f32 %v1320_v45, %v1321_v39 }
 0x245   :  { %v830_v1 = vrot.slane %v829_v63, 2 }
 0x246   :  { %v1418_v24 = vsel %vm1378_vm8, %v1322_v21, %v1417_v17  ;;  %v1250_v17 = vpop.permute.xlu2 %1249 }
 0x247   :  { %v831_v57 = vmax.f32 %v829_v63, %v830_v1  ;;  %v1288_v27 = vadd.f32 %v1250_v17, %v2412_v46 }
 0x249   :  { %v832_v31 = vrot.slane %v831_v57, 1 }
 0x24b   :  { %v833_v55 = vmax.f32 %v831_v57, %v832_v31  ;;  %v1246_v59 = vpop.permute.xlu0 %1245 }
 0x24c   :  { %v2459_v36 = vpop.permute.xlu1 %663  ;;  %v1286_v60 = vadd.f32 %v1246_v59, %v2415_v62 }
 0x24d   :  { %v1402_v4 = vsel %vm1382_vm11, %v833_v55, %v1401_v19 }
 0x24e   :  { %v1324_v43 = vsel %vm1296_vm15, %v1286_v60, -inf  ;;  %v2470_v44 = vpop.permute.xlu2 %1170 }
 0x24f   :  { %v1325_v6 = vmax.f32 %v1323_v49, %v1324_v43  ;;  %v1201_v43 = vadd.f32 %v1165_v25, %v2362_v29  ;;  %v2548_v25 = vld [vmem:[#allocation6_spill] sm:$0xff] }
 0x251   :  { %v1326_v18 = vrot.slane %v1325_v6, 4 }
 0x253   :  { %v1327_v16 = vmax.f32 %v1325_v6, %v1326_v18  ;;  %v745_v56 = vpop.permute.xlu0 %744  ;;  %v1200_v18 = vadd.f32 %v1163_v20, %v2407_v52  ;;  %v2549_v20 = vld [vmem:[#allocation7_spill] sm:$0xff] }
 0x254   :  { %v747_v54 = vpop.permute.xlu1 %746  ;;  %v782_v8 = vadd.f32 %v745_v56, %v2313_v50  ;;  %v1333_v50 = vsel %vm1296_vm15, %v1288_v27, -inf  ;;  %v609_v27 = vadd.f32 %v2549_v20, %v1833_v2  ;;  %v1028_v2 = vadd.f32 %v2344_v0, %v2165_v32  ;;  %v1439_v20 = vld [vmem:[%s2539_s5 + $0x8] sm:$0xf] }
 0x255   :  { %v783_v30 = vadd.f32 %v747_v54, %v2290_v14  ;;  %v1328_v33 = vrot.slane %v1327_v16, 2 }
 0x256   :  { %v834_v62 = vsel %vm368_vm5, %v782_v8, -inf }
 0x257   :  { %v835_v5 = vsel %vm789_vm6, %v783_v30, -inf  ;;  %v1329_v28 = vmax.f32 %v1327_v16, %v1328_v33 }
 0x258   :  { %v836_v19 = vmax.f32 %v834_v62, %v835_v5 }
 0x259   :  { %v1330_v47 = vrot.slane %v1329_v28, 1 }
 0x25a   :  { %v837_v61 = vrot.slane %v836_v19, 4 }
 0x25b   :  { %v1331_v26 = vmax.f32 %v1329_v28, %v1330_v47  ;;  %v2473_v53 = vpop.permute.xlu0 %1168 }
 0x25c   :  { %v1248_v9 = vpop.permute.xlu1 %1247  ;;  %v838_v48 = vmax.f32 %v836_v19, %v837_v61  ;;  %v610_v19 = vadd.f32 %v2548_v25, %v1849_v10  ;;  %v1029_v61 = vadd.f32 %v2409_v22, %v2182_v38 }
 0x25d   :  { %v1287_v14 = vadd.f32 %v1248_v9, %v2437_v41  ;;  %v1419_v45 = vsel %vm1380_vm10, %v1331_v26, %v1418_v24  ;;  %v1254_v41 = vpop.permute.xlu2 %1253 }
 0x25e   :  { %v839_v37 = vrot.slane %v838_v48, 2  ;;  %v1290_v54 = vadd.f32 %v1254_v41, %v1201_v43  ;;  %v698_v9 = vadd.f32 %v2450_v35, %v610_v19  ;;  %v1203_v41 = vadd.f32 %v2473_v53, %v2439_v3 }
 0x25f   :  { %v1332_v12 = vsel %vm368_vm5, %v1287_v14, -inf }
 0x260   :  { %v1334_v40 = vmax.f32 %v1332_v12, %v1333_v50  ;;  %v840_v46 = vmax.f32 %v838_v48, %v839_v37  ;;  %v697_v48 = vadd.f32 %v2459_v36, %v609_v27  ;;  %v1117_v37 = vadd.f32 %v2432_v15, %v1029_v61 }
 0x261   :  { %v1202_v15 = vadd.f32 %v2456_v13, %v2405_v7  ;;  %v1449_v27 = vunpack.c.l.b16 %v1439_v20 }
 0x262   :  { %v1335_v39 = vrot.slane %v1334_v40, 4  ;;  %v841_v11 = vrot.slane %v840_v46, 1 }
 0x263   :  { %v749_v31 = vpop.permute.xlu0 %748 }
 0x264   :  { %v1336_v21 = vmax.f32 %v1334_v40, %v1335_v39  ;;  %v751_v63 = vpop.permute.xlu1 %750  ;;  %v842_v1 = vmax.f32 %v840_v46, %v841_v11  ;;  %v784_v55 = vadd.f32 %v749_v31, %v2366_v23  ;;  %v1116_v11 = vadd.f32 %v2448_v51, %v1028_v2 }
 0x265   :  { %v785_v57 = vadd.f32 %v751_v63, %v2346_v34  ;;  %v1256_v28 = vpop.permute.xlu2 %1255 }
 0x266   :  { %v1337_v58 = vrot.slane %v1336_v21, 2  ;;  %v1403_v60 = vsel %vm1384_vm12, %v842_v1, %v1402_v4  ;;  %v843_v24 = vsel %vm368_vm5, %v784_v55, -inf  ;;  %v1342_v4 = vsel %vm1296_vm15, %v1290_v54, -inf }
 0x267   :  { %v844_v59 = vsel %vm789_vm6, %v785_v57, -inf  ;;  %v1204_v57 = vadd.f32 %v2470_v44, %v1116_v11  ;;  %v1291_v0 = vadd.f32 %v1256_v28, %v1202_v15 }
 0x268   :  { %v1338_v49 = vmax.f32 %v1336_v21, %v1337_v58  ;;  %v845_v6 = vmax.f32 %v843_v24, %v844_v59 }
 0x269   :  { %v1350_v44 = vsel %vm368_vm5, %v1291_v0, -inf }
 0x26a   :  { %v1339_v17 = vrot.slane %v1338_v49, 1  ;;  %v846_v34 = vrot.slane %v845_v6, 4 }
 0x26b   :  { %v1173_v23 = vpop.permute.xlu0 %1172 }
 0x26c   :  { %v1340_v16 = vmax.f32 %v1338_v49, %v1339_v17  ;;  %v1252_v30 = vpop.permute.xlu1 %1251  ;;  %v847_v56 = vmax.f32 %v845_v6, %v846_v34  ;;  %v1205_v39 = vadd.f32 %v1173_v23, %v1117_v37 }
 0x26d   :  { %v1289_v8 = vadd.f32 %v1252_v30, %v1200_v18  ;;  %v1262_v63 = vpop.permute.xlu2 %1261 }
 0x26e   :  { %v1420_v33 = vsel %vm1382_vm11, %v1340_v16, %v1419_v45  ;;  %v848_v5 = vrot.slane %v847_v56, 2  ;;  %v1294_v31 = vadd.f32 %v1262_v63, %v1205_v39 }
 0x26f   :  { %v1341_v62 = vsel %vm368_vm5, %v1289_v8, -inf }
 0x270   :  { %v1343_v29 = vmax.f32 %v1341_v62, %v1342_v4  ;;  %v849_v52 = vmax.f32 %v847_v56, %v848_v5  ;;  %v1360_v13 = vsel %vm1296_vm15, %v1294_v31, -inf }
 0x272   :  { %v1344_v47 = vrot.slane %v1343_v29, 4  ;;  %v850_v26 = vrot.slane %v849_v52, 1 }
 0x273   :  { %v753_v45 = vpop.permute.xlu0 %752 }
 0x274   :  { %v1345_v14 = vmax.f32 %v1343_v29, %v1344_v47  ;;  %v755_v50 = vpop.permute.xlu1 %754  ;;  %v851_v10 = vmax.f32 %v849_v52, %v850_v26  ;;  %v786_v46 = vadd.f32 %v753_v45, %v697_v48  ;;  %v1451_v47 = vpack.c.b16 %v1449_v27, %v1449_v27  ;;  %v1603_v48 = vld [vmem:[%s2538_s4] ss:$0 sm:$0xff]  ;;  %s1481_s4 = sshll.u32 %s2541_s7, 4  ;;  %s1482_s4 = int_to_ptr.hbm [resolvable:$true] %s1481_s4 }
 0x275   :  { %v787_v12 = vadd.f32 %v755_v50, %v698_v9  ;;  %v1589_v9 = vld [vmem:[%s2539_s5] sm:$0xff]  ;;  %s1637_s5 = smov [#allocation2]  }
 0x276   :  { %v1346_v40 = vrot.slane %v1345_v14, 2  ;;  %v1404_v22 = vsel %vm1386_vm13, %v851_v10, %v1403_v60  ;;  %v852_v36 = vsel %vm368_vm5, %v786_v46, -inf  ;;  %v1458_v61 = vsel %vm1206_vm9, %v1451_v47, 0  ;;  %s1479_s2 = sshll.u32 %s1637_s5, 4  ;;  %s1480_s2 = int_to_ptr.vmem [resolvable:$true] %s1479_s2 }
 0x277   :  { %v853_v38 = vsel %vm789_vm6, %v787_v12, -inf  ;;  %1466 = vmatpush.bf16.msrb.mxu3 %v1458_v61 }
 0x278   :  { %v1347_v35 = vmax.f32 %v1345_v14, %v1346_v40  ;;  %v854_v21 = vmax.f32 %v852_v36, %v853_v38  ;;  %v1604_v40 = vld [vmem:[%s2540_s6] ss:$0 sm:$0xff] }
 0x27a   :  { %v1348_v1 = vrot.slane %v1347_v35, 1  ;;  %v855_v32 = vrot.slane %v854_v21, 4 }
 0x27b   :  { %v1258_v49 = vpop.permute.xlu0 %1257  ;;  %1467 = vmatpush.bf16.msrb.mxu3 %v1589_v9 }
 0x27c   :  { %v1349_v58 = vmax.f32 %v1347_v35, %v1348_v1  ;;  %v1260_v55 = vpop.permute.xlu1 %1259  ;;  %v856_v59 = vmax.f32 %v854_v21, %v855_v32  ;;  %v1292_v51 = vadd.f32 %v1258_v49, %v1203_v41 }
 0x27d   :  { %v1293_v60 = vadd.f32 %v1260_v55, %v1204_v57 }
 0x27e   :  { %v1421_v24 = vsel %vm1384_vm12, %v1349_v58, %v1420_v33  ;;  %v857_v43 = vrot.slane %v856_v59, 2  ;;  %v1351_v17 = vsel %vm1296_vm15, %v1292_v51, -inf }
 0x27f   :  { %v1359_v7 = vsel %vm368_vm5, %v1293_v60, -inf  ;;  %v1352_v3 = vmax.f32 %v1350_v44, %v1351_v17 }
 0x280   :  { %v1361_v6 = vmax.f32 %v1359_v7, %v1360_v13  ;;  %v858_v18 = vmax.f32 %v856_v59, %v857_v43 }
 0x281   :  { %v1353_v54 = vrot.slane %v1352_v3, 4 }
 0x282   :  { %v1362_v53 = vrot.slane %v1361_v6, 4  ;;  %v859_v34 = vrot.slane %v858_v18, 1 }
 0x283   :  { %v1354_v30 = vmax.f32 %v1352_v3, %v1353_v54 }
 0x284   :  { %v1363_v16 = vmax.f32 %v1361_v6, %v1362_v53  ;;  %v860_v56 = vmax.f32 %v858_v18, %v859_v34 }
 0x285   :  { %v1355_v23 = vrot.slane %v1354_v30, 2 }
 0x286   :  { %v1364_v8 = vrot.slane %v1363_v16, 2  ;;  %v1405_v33 = vsel %vm1388_vm14, %v860_v56, %v1404_v22 }
 0x287   :  { %1406 = vrot.lane.b32.xlu0 %v1405_v33, %s1635_s29  ;;  %v1356_v5 = vmax.f32 %v1354_v30, %v1355_v23 }
 0x288   :  { %v1365_v4 = vmax.f32 %v1363_v16, %v1364_v8 }
 0x289   :  { %v1357_v28 = vrot.slane %v1356_v5, 1 }
 0x28a   :  { %v1366_v62 = vrot.slane %v1365_v4, 1 }
 0x28b   :  { %v1358_v25 = vmax.f32 %v1356_v5, %v1357_v28 }
 0x28c   :  { %v1367_v29 = vmax.f32 %v1365_v4, %v1366_v62 }
 0x28d   :  { %v1422_v19 = vsel %vm1386_vm13, %v1358_v25, %v1421_v24 }
 0x28e   :  { %v1423_v52 = vsel %vm1388_vm14, %v1367_v29, %v1422_v19 }
 0x28f   :  { %1424 = vrot.lane.b32.xlu1 %v1423_v52, %s1636_s30 }
 0x2f9   :  { %v1407_v26 = vpop.permute.xlu0 %1406 }
 0x2fa   :  { %v1427_v14 = vsel %vm368_vm5, %v2395_v42, %v1407_v26 }
 0x301   :  { %v1425_v50 = vpop.permute.xlu1 %1424 }
 0x302   :  { %v1429_v37 = vsel %vm1428_vm0, %v1427_v14, %v1425_v50 }
 0x303   :  { %v1434_v12 = vadd.f32 %v1603_v48, %v1429_v37 }
 0x305   :  { %v1435_v45 = vmax.f32 %v1434_v12, 0.0 }
 0x307   :  { %v1436_v10 = vpack.c.bf16 %v1435_v45, %v1435_v45 }
 0x309   :  { %1574 = vmatmul.msk.bf16.vlgmr.msrb.gmra.mxu3 %vm1453_vm1, %v1436_v10 }
 0x38c   :  { %v1469_v46 = vpop.f32.mrf.mxu3 }
 0x38d   :  { %v1470_v2 = vadd.f32 %v1604_v40, %v1469_v46 }
 0x38f   :  { %1473 = vst [vmem:[#allocation2] sm:$0xff] %v1470_v2 }
 0x390   :  { %1484 = dma.vmem_to_hbm [thread:$0]  %s1480_s2, 128, %s1482_s4, [#allocation3]  }
 0x394   :  { %v1471_v42 = vpop.f32.mrf.mxu3 }
 0x395   :  { %1629 = dma.done.wait [#allocation3], 128  }
 0x396   :  { %1630 = vsyncadd [#allocation3], 4294967168 }
 0x397   :  { %1489 = vsyncpa [#allocation3], 1 }

</bundles_post_ra>
